<compile_context>
chip_gen: v7x
topology: tpu7x:2x2x1
jax: 0.10.0
libtpu: 0.0.40
codegen_flags: <defaults>
</compile_context>

<pallas_src>
import functools
import math

import jax
import jax.numpy as jnp
from jax.experimental import pallas as pl
from jax.experimental.pallas import tpu as pltpu

LANE = 128          # TPU vreg lane width
SUBLANE_BF16 = 16   # bf16 minimum sublane tile


def _round_up(n, m):
    return ((n + m - 1) // m) * m


def _pad2d(a, shape):
    """Zero-pad a 2-D array up to `shape` (rows then cols)."""
    return jnp.pad(a, ((0, shape[0] - a.shape[0]), (0, shape[1] - a.shape[1])))


# ---------------------------------------------------------------------------
# Fused path: whole forward in one pallas_call (adj resident in VMEM once).
# ---------------------------------------------------------------------------
def gcn_fused_kernel(x_ref, adj_ref, w1_ref, b1_ref, w2_ref, b2_ref, out_ref):
    # Layer 1: support then aggregate (+bias, relu).  All dots accumulate f32.
    s1 = jnp.dot(x_ref[...], w1_ref[...],
                 preferred_element_type=jnp.float32).astype(x_ref.dtype)
    h = jnp.dot(adj_ref[...], s1,
                preferred_element_type=jnp.float32) + b1_ref[...]
    h = jnp.maximum(h, 0.0).astype(x_ref.dtype)
    # Layer 2.
    s2 = jnp.dot(h, w2_ref[...],
                 preferred_element_type=jnp.float32).astype(x_ref.dtype)
    out = jnp.dot(adj_ref[...], s2,
                  preferred_element_type=jnp.float32) + b2_ref[...]
    out_ref[...] = out


def _gcn_fused(x_bf, adj_bf, w1p, b1p, w2p, b2p):
    n, fin = x_bf.shape
    hp = w1p.shape[1]
    cp = w2p.shape[1]
    flops = 2 * n * (fin * hp + n * hp + hp * cp + n * cp)
    bytes_accessed = (2 * (x_bf.size + adj_bf.size + w1p.size + w2p.size)
                      + 4 * (b1p.size + b2p.size) + 4 * n * cp)
    return pl.pallas_call(
        gcn_fused_kernel,
        out_shape=jax.ShapeDtypeStruct((n, cp), jnp.float32),
        compiler_params=pltpu.CompilerParams(
            vmem_limit_bytes=48 * 1024 * 1024),
        cost_estimate=pl.CostEstimate(
            flops=int(flops), transcendentals=0,
            bytes_accessed=int(bytes_accessed)),
    )(x_bf, adj_bf, w1p, b1p, w2p, b2p)


# ---------------------------------------------------------------------------
# Tiled path (large graphs): support = feat @ W, then K-tiled aggregation.
# ---------------------------------------------------------------------------
def support_kernel(feat_ref, w_ref, out_ref):
    """out = feat @ W for one row stripe (f32 accumulate, bf16 out)."""
    out_ref[...] = jnp.dot(feat_ref[...], w_ref[...],
                           preferred_element_type=jnp.float32
                           ).astype(out_ref.dtype)


def _support(feat_bf, w_bf, *, tm):
    n, fin = feat_bf.shape
    fout = w_bf.shape[1]
    assert n % tm == 0 and tm % SUBLANE_BF16 == 0 and fout % LANE == 0
    grid = (n // tm,)
    flops = 2 * n * fin * fout
    bytes_accessed = 2 * (feat_bf.size + w_bf.size * grid[0] + n * fout)
    return pl.pallas_call(
        support_kernel,
        out_shape=jax.ShapeDtypeStruct((n, fout), jnp.bfloat16),
        grid=grid,
        in_specs=[
            pl.BlockSpec((tm, fin), lambda i: (i, 0)),    # feature row stripe
            pl.BlockSpec((fin, fout), lambda i: (0, 0)),  # full weight
        ],
        out_specs=pl.BlockSpec((tm, fout), lambda i: (i, 0)),
        compiler_params=pltpu.CompilerParams(
            dimension_semantics=("parallel",)),
        cost_estimate=pl.CostEstimate(
            flops=int(flops), transcendentals=0,
            bytes_accessed=int(bytes_accessed)),
    )(feat_bf, w_bf)


def gcn_agg_kernel(support_ref, b_ref, adj_ref, out_ref, acc_ref, *,
                   apply_relu):
    """out_stripe = adj_stripe @ support + b (K-tiled accumulation).

    support_ref : [tk, Fp]  bf16 column block of the precomputed support
    b_ref       : [1, Fp]   f32 bias (lane-padded)
    adj_ref     : [tm, tk]  bf16 adjacency tile
    out_ref     : [tm, Fp]  output stripe (written on the last K step)
    acc_ref     : [tm, Fp]  f32 VMEM accumulator (persists across K)
    """
    k = pl.program_id(1)

    @pl.when(k == 0)
    def _():
        acc_ref[...] = jnp.zeros_like(acc_ref)

    acc_ref[...] += jnp.dot(adj_ref[...], support_ref[...],
                            preferred_element_type=jnp.float32)

    @pl.when(k == pl.num_programs(1) - 1)
    def _():
        out = acc_ref[...] + b_ref[...]
        if apply_relu:
            out = jnp.maximum(out, 0.0)
        out_ref[...] = out.astype(out_ref.dtype)


def _gcn_agg(support_bf, b_f32, adj_bf, *, apply_relu, out_dtype, tm, tk):
    n = adj_bf.shape[0]
    fout = support_bf.shape[1]
    assert n % tm == 0 and n % tk == 0
    assert tm % SUBLANE_BF16 == 0 and tk % LANE == 0 and fout % LANE == 0
    grid = (n // tm, n // tk)  # reduction axis last, marked "arbitrary"

    out_itemsize = jnp.dtype(out_dtype).itemsize
    flops = 2 * n * n * fout
    bytes_accessed = (2 * adj_bf.size + 2 * support_bf.size * grid[0]
                      + 4 * b_f32.size + n * fout * out_itemsize)

    kernel = functools.partial(gcn_agg_kernel, apply_relu=apply_relu)
    return pl.pallas_call(
        kernel,
        out_shape=jax.ShapeDtypeStruct((n, fout), out_dtype),
        grid=grid,
        in_specs=[
            pl.BlockSpec((tk, fout), lambda i, k: (k, 0)),  # support col block
            pl.BlockSpec((1, fout), lambda i, k: (0, 0)),   # bias row
            pl.BlockSpec((tm, tk), lambda i, k: (i, k)),    # adjacency tile
        ],
        out_specs=pl.BlockSpec((tm, fout), lambda i, k: (i, 0)),
        scratch_shapes=[pltpu.VMEM((tm, fout), jnp.float32)],
        compiler_params=pltpu.CompilerParams(
            dimension_semantics=("parallel", "arbitrary")),
        cost_estimate=pl.CostEstimate(
            flops=int(flops), transcendentals=0,
            bytes_accessed=int(bytes_accessed)),
    )(support_bf, b_f32, adj_bf)


# ---------------------------------------------------------------------------
# Full forward.
# ---------------------------------------------------------------------------
def gcn_forward(x, adj, w1, b1, w2, b2, *, tile=512,
                fuse_vmem_budget=36 * 1024 * 1024, force_tiled=False):
    """GCN forward: relu(adj @ (x@W1) + b1) -> adj @ (h@W2) + b2."""
    N = adj.shape[0]
    nfeat = x.shape[1]
    nclass = w2.shape[1]
    hp = _round_up(w1.shape[1], LANE)   # lane-padded hidden width
    cp = _round_up(nclass, LANE)        # lane-padded class width

    # bf16 inputs (f32 accumulation inside the kernels).  Padded lanes stay
    # exact zeros all the way through (relu(0)=0, 0*W=0).  Callers that reuse
    # adj across many forwards should pass a pre-cast bf16 adj so this cast
    # (4*N^2 read + 2*N^2 write of HBM) happens once, not per call.
    x_bf = x.astype(jnp.bfloat16)
    adj_bf = adj if adj.dtype == jnp.bfloat16 else adj.astype(jnp.bfloat16)
    b1 = jnp.reshape(b1, (1, -1))
    b2 = jnp.reshape(b2, (1, -1))
    w1p = _pad2d(w1, (nfeat, hp)).astype(jnp.bfloat16)
    b1p = _pad2d(b1, (1, hp)).astype(jnp.float32)
    w2p = _pad2d(w2, (hp, cp)).astype(jnp.bfloat16)
    b2p = _pad2d(b2, (1, cp)).astype(jnp.float32)

    # Rough VMEM estimate for the fused single-shot kernel: adj + x + weights
    # + (s1, h, s2, out) activation temps.
    fused_vmem = (2 * (N * N + N * nfeat + w1p.size + w2p.size)
                  + N * hp * (2 + 2 + 4) + N * cp * (2 + 4 + 4))
    if not force_tiled and fused_vmem <= fuse_vmem_budget:
        out_p = _gcn_fused(x_bf, adj_bf, w1p, b1p, w2p, b2p)
        return out_p[:, :nclass]

    # --- Tiled path for large graphs ---
    tm = tk = max(SUBLANE_BF16, min(tile, _round_up(N, LANE)))
    Np = _round_up(N, max(tm, tk))
    # Padded adjacency rows/cols are zero, so padded nodes never contaminate
    # the first N output rows; padded rows are sliced off below.
    x_p = _pad2d(x_bf, (Np, nfeat))
    adj_p = _pad2d(adj_bf, (Np, Np))

    s1 = _support(x_p, w1p, tm=tm)                              # [Np, hp] bf16
    h = _gcn_agg(s1, b1p, adj_p, apply_relu=True,
                 out_dtype=jnp.bfloat16, tm=tm, tk=tk)          # [Np, hp] bf16
    s2 = _support(h, w2p, tm=tm)                                # [Np, cp] bf16
    out_p = _gcn_agg(s2, b2p, adj_p, apply_relu=False,
                     out_dtype=jnp.float32, tm=tm, tk=tk)       # [Np, cp] f32
    # NOTE: final write is lane-padded (cp=128 cols) f32; negligible vs. the
    # adj stream for large N, so we keep the lane-dense unmasked store.
    return out_p[:N, :nclass]


def init_gcn_params(key, nfeat, nhid, nclass):
    """Mirror GraphConvolution.reset_parameters: U(-1/sqrt(out), 1/sqrt(out))."""
    k1, k2, k3, k4 = jax.random.split(key, 4)
    stdv1 = 1.0 / math.sqrt(nhid)
    stdv2 = 1.0 / math.sqrt(nclass)
    w1 = jax.random.uniform(k1, (nfeat, nhid), jnp.float32, -stdv1, stdv1)
    b1 = jax.random.uniform(k2, (1, nhid), jnp.float32, -stdv1, stdv1)
    w2 = jax.random.uniform(k3, (nhid, nclass), jnp.float32, -stdv2, stdv2)
    b2 = jax.random.uniform(k4, (1, nclass), jnp.float32, -stdv2, stdv2)
    return w1, b1, w2, b2


if __name__ == "__main__":
    # Small synthetic graph.
    N, nfeat, nhid, nclass = 512, 64, 32, 16

    key = jax.random.PRNGKey(0)
    kx, kadj, kparams = jax.random.split(key, 3)

    # Node features.
    x = jax.random.normal(kx, (N, nfeat), dtype=jnp.float32)

    # Dense symmetric row-normalized adjacency with self loops.
    # TODO(synk): the original uses torch.spmm on a sparse adj; here adj is dense.
    a = (jax.random.uniform(kadj, (N, N)) < 0.05).astype(jnp.float32)
    a = jnp.maximum(a, a.T) + jnp.eye(N, dtype=jnp.float32)
    deg = jnp.sum(a, axis=1, keepdims=True)
    adj = a / deg

    w1, b1, w2, b2 = init_gcn_params(kparams, nfeat, nhid, nclass)

    # Fused (single pallas_call) path -- what the demo shapes use.
    out = jax.block_until_ready(gcn_forward(x, adj, w1, b1, w2, b2))
    assert out.shape == (N, nclass)

    # Also exercise the K-tiled large-graph path (2x2 grid at tile=256).
    out_tiled = jax.block_until_ready(
        gcn_forward(x, adj, w1, b1, w2, b2, force_tiled=True, tile=256))
    assert out_tiled.shape == (N, nclass)

    # Reference 1: same bf16-input / f32-accumulate math in plain JAX.
    xb, ab = x.astype(jnp.bfloat16), adj.astype(jnp.bfloat16)
    w1b, w2b = w1.astype(jnp.bfloat16), w2.astype(jnp.bfloat16)
    s1 = jnp.dot(xb, w1b, preferred_element_type=jnp.float32).astype(jnp.bfloat16)
    h_ref = jnp.maximum(jnp.dot(ab, s1, preferred_element_type=jnp.float32) + b1, 0.0)
    h_ref = h_ref.astype(jnp.bfloat16)
    s2 = jnp.dot(h_ref, w2b, preferred_element_type=jnp.float32).astype(jnp.bfloat16)
    out_ref_bf16 = jnp.dot(ab, s2, preferred_element_type=jnp.float32) + b2
    assert jnp.allclose(out, out_ref_bf16, atol=1e-3, rtol=1e-2)
    assert jnp.allclose(out_tiled, out_ref_bf16, atol=1e-3, rtol=1e-2)
    assert jnp.allclose(out, out_tiled, atol=1e-3, rtol=1e-2)

    # Reference 2: full-f32 math (looser tolerance covers the bf16 input cast).
    h32 = jnp.maximum(adj @ (x @ w1) + b1, 0.0)
    out_ref_f32 = adj @ (h32 @ w2) + b2
    assert jnp.allclose(out, out_ref_f32, atol=6e-2, rtol=6e-2)
    assert jnp.allclose(out_tiled, out_ref_f32, atol=6e-2, rtol=6e-2)

    print("KERNEL_OK")
</pallas_src>

<mosaic_0001>
module attributes {stable_mosaic.version = 11 : i64} {
  func.func @gcn_fused_kernel(%arg0: memref<512x64xbf16, #tpu.memory_space<vmem>>, %arg1: memref<512x512xbf16, #tpu.memory_space<vmem>>, %arg2: memref<64x128xbf16, #tpu.memory_space<vmem>>, %arg3: memref<1x128xf32, #tpu.memory_space<vmem>>, %arg4: memref<128x128xbf16, #tpu.memory_space<vmem>>, %arg5: memref<1x128xf32, #tpu.memory_space<vmem>>, %arg6: memref<512x128xf32, #tpu.memory_space<vmem>>) attributes {dimension_semantics = [], scalar_prefetch = 0 : i64, scratch_operands = 0 : i64, tpu.core_type = #tpu.core_type<tc>} {
    %c0 = arith.constant 0 : index
    %c0_0 = arith.constant 0 : index
    %0 = vector.load %arg0[%c0, %c0_0] : memref<512x64xbf16, #tpu.memory_space<vmem>>, vector<512x64xbf16>
    %c0_1 = arith.constant 0 : index
    %c0_2 = arith.constant 0 : index
    %1 = vector.load %arg2[%c0_1, %c0_2] : memref<64x128xbf16, #tpu.memory_space<vmem>>, vector<64x128xbf16>
    %cst = arith.constant dense<0.000000e+00> : vector<512x128xf32>
    %2 = tpu.matmul %0, %1, %cst {dimension_numbers = #tpu.dot_dimension_numbers<[1], [0], [0], [1], [0, 0, 1, 1], [], []>} : vector<512x64xbf16>, vector<64x128xbf16>, vector<512x128xf32> -> vector<512x128xf32>
    %3 = arith.truncf %2 : vector<512x128xf32> to vector<512x128xbf16>
    %c0_3 = arith.constant 0 : index
    %c0_4 = arith.constant 0 : index
    %4 = vector.load %arg1[%c0_3, %c0_4] : memref<512x512xbf16, #tpu.memory_space<vmem>>, vector<512x512xbf16>
    %cst_5 = arith.constant dense<0.000000e+00> : vector<512x128xf32>
    %5 = tpu.matmul %4, %3, %cst_5 {dimension_numbers = #tpu.dot_dimension_numbers<[1], [0], [0], [1], [0, 0, 1, 1], [], []>} : vector<512x512xbf16>, vector<512x128xbf16>, vector<512x128xf32> -> vector<512x128xf32>
    %c0_6 = arith.constant 0 : index
    %c0_7 = arith.constant 0 : index
    %6 = vector.load %arg3[%c0_6, %c0_7] : memref<1x128xf32, #tpu.memory_space<vmem>>, vector<1x128xf32>
    %7 = vector.broadcast %6 : vector<1x128xf32> to vector<512x128xf32>
    %8 = arith.addf %5, %7 : vector<512x128xf32>
    %cst_8 = arith.constant 0.000000e+00 : f32
    %9 = vector.broadcast %cst_8 : f32 to vector<512x128xf32>
    %10 = arith.maximumf %8, %9 : vector<512x128xf32>
    %11 = arith.truncf %10 : vector<512x128xf32> to vector<512x128xbf16>
    %c0_9 = arith.constant 0 : index
    %c0_10 = arith.constant 0 : index
    %12 = vector.load %arg4[%c0_9, %c0_10] : memref<128x128xbf16, #tpu.memory_space<vmem>>, vector<128x128xbf16>
    %cst_11 = arith.constant dense<0.000000e+00> : vector<512x128xf32>
    %13 = tpu.matmul %11, %12, %cst_11 {dimension_numbers = #tpu.dot_dimension_numbers<[1], [0], [0], [1], [0, 0, 1, 1], [], []>} : vector<512x128xbf16>, vector<128x128xbf16>, vector<512x128xf32> -> vector<512x128xf32>
    %14 = arith.truncf %13 : vector<512x128xf32> to vector<512x128xbf16>
    %c0_12 = arith.constant 0 : index
    %c0_13 = arith.constant 0 : index
    %15 = vector.load %arg1[%c0_12, %c0_13] : memref<512x512xbf16, #tpu.memory_space<vmem>>, vector<512x512xbf16>
    %cst_14 = arith.constant dense<0.000000e+00> : vector<512x128xf32>
    %16 = tpu.matmul %15, %14, %cst_14 {dimension_numbers = #tpu.dot_dimension_numbers<[1], [0], [0], [1], [0, 0, 1, 1], [], []>} : vector<512x512xbf16>, vector<512x128xbf16>, vector<512x128xf32> -> vector<512x128xf32>
    %c0_15 = arith.constant 0 : index
    %c0_16 = arith.constant 0 : index
    %17 = vector.load %arg5[%c0_15, %c0_16] : memref<1x128xf32, #tpu.memory_space<vmem>>, vector<1x128xf32>
    %18 = vector.broadcast %17 : vector<1x128xf32> to vector<512x128xf32>
    %19 = arith.addf %16, %18 : vector<512x128xf32>
    %c0_17 = arith.constant 0 : index
    %c0_18 = arith.constant 0 : index
    %20 = vector.load %arg6[%c0_17, %c0_18] : memref<512x128xf32, #tpu.memory_space<vmem>>, vector<512x128xf32>
    tpu.vector_store %arg6[%c0_17, %c0_18], %19 {strides = array<i32>} : memref<512x128xf32, #tpu.memory_space<vmem>>, vector<512x128xf32>,
    return
  }
}

</mosaic_0001>

<bundles_post_ra>
// kernel: tpu_custom_call.1
= control target key start
LH: loop header
LB: loop body
LE: loop exit
PB: predicated region body
PF: predicated region fallthrough
CT: control target
= control target key end

     0   :  { %11 = vsyncpa [#allocation3], 0  ;;  %s4898_s0 = inlined_call_operand.vmem [shape: bf16[512,64], index: 0, kind: input, shape index: {}]   ;;  %s4899_s1 = inlined_call_operand.hbm [shape: bf16[512,512], index: 1, kind: input, shape index: {}]   ;;  %s4900_s2 = inlined_call_operand.vmem [shape: bf16[64,128], index: 2, kind: input, shape index: {}]   ;;  %s4901_s3 = inlined_call_operand.vmem [shape: f32[1,128], index: 3, kind: input, shape index: {}]   ;;  %s4902_s4 = inlined_call_operand.vmem [shape: bf16[128,128], index: 4, kind: input, shape index: {}]   ;;  %s4903_s5 = inlined_call_operand.vmem [shape: f32[1,128], index: 5, kind: input, shape index: {}]   ;;  %s4904_s6 = inlined_call_operand.hbm [shape: f32[512,128], index: 6, kind: output, shape index: {}]  }
   0x1   :  { %12 = vsyncpa [#allocation4], 0  ;;  %s4466_s21 = smov [#allocation2]   ;;  %s4418_s25 = scalar_lea.hbm %s4899_s1, 16384 }
   0x2   :  { %s20_s22 = sshll.u32 %s4466_s21, 4  ;;  %p4419_p0 = scmp.ne.s32.totalorder %s4899_s1, %s4418_s25  ;;  %s21_s22 = int_to_ptr.vmem [resolvable:$true] %s20_s22 }
   0x3   :  { %p4422_p1 = scmp.lt.u32.totalorder %s4418_s25, %s4899_s1 }
   0x5   :  { %p4424_p2 = pnand %p4422_p1, %p4419_p0 }
   0x7   :  { %4427 = shalt.err (!%p4424_p2)
}
   0x8   :  { %s4428_s30 = scalar_lea.vmem %s21_s22, 16384  ;;  %p4433_p4 = scmp.lt.s32.totalorder %s21_s22, %s21_s22 }
   0x9   :  { %p4429_p3 = scmp.ne.s32.totalorder %s21_s22, %s4428_s30  ;;  %p4434_p5 = scmp.lt.s32.totalorder %s4428_s30, %s4428_s30 }
   0xb   :  { %p4435_p6 = por %p4434_p5, %p4433_p4 }
   0xd   :  { %p4436_p7 = pnand %p4435_p6, %p4429_p3 }
   0xf   :  { %4439 = shalt.err (!%p4436_p7)
}
  0x10   :  { %s4467_s7 = smov 256   ;;  %s4468_s8 = smov 16  }
  0x11   :  { %26 = dma.hbm_to_vmem [thread:$0]  %s4899_s1, 16384, %s21_s22, [#allocation3], %s4467_s7, %s4467_s7, %s4468_s8  }
  0x12   :  { %4462 = dma.done.wait [#allocation3], 16384  }
  0x13   :  { %4463 = vsyncadd [#allocation3], 4294950912  ;;  %v4054_v0 = vld [vmem:[%s4900_s2] sm:$0xff]   ;;  %v4055_v1 = vld [vmem:[%s4900_s2 + $0x8] sm:$0xff]   ;;  %vm295_vm0 = vcmask 523264   ;;  %v4469_v28 = vmov 0  }
  0x14   :  { %3495 = vmatprep.subr.bf16.mxu1 %v4054_v0  ;;  %v4056_v2 = vld [vmem:[%s4900_s2 + $0x10] sm:$0xff]   ;;  %v4058_v3 = vld [vmem:[%s4898_s0] sm:$0xff]   ;;  %v4057_v4 = vld [vmem:[%s4900_s2 + $0x18] sm:$0xff]  }
  0x15   :  { %3496 = vmatpush3.bf16.msra.mxu1 %v4054_v0  ;;  %3503 = vmatprep.mubr.msk.bf16.mxu1 %vm295_vm0, %v4058_v3  ;;  %v4059_v5 = vld [vmem:[%s4898_s0 + $0x8] sm:$0xff]   ;;  %v4060_v6 = vld [vmem:[%s4898_s0 + $0x10] sm:$0xff]   ;;  %v4061_v7 = vld [vmem:[%s4898_s0 + $0x18] sm:$0xff]  }
  0x16   :  { %3497 = vmatprep.subr.bf16.mxu1 %v4055_v1  ;;  %v4062_v8 = vld [vmem:[%s4898_s0 + $0x20] sm:$0xff]   ;;  %v4063_v9 = vld [vmem:[%s4898_s0 + $0x28] sm:$0xff]   ;;  %v4064_v10 = vld [vmem:[%s4898_s0 + $0x30] sm:$0xff]  }
  0x17   :  { %v4065_v11 = vld [vmem:[%s4898_s0 + $0x38] sm:$0xff]   ;;  %v4066_v12 = vld [vmem:[%s4898_s0 + $0x40] sm:$0xff]   ;;  %v4067_v13 = vld [vmem:[%s4898_s0 + $0x48] sm:$0xff]  }
  0x18   :  { %v4068_v14 = vld [vmem:[%s4898_s0 + $0x50] sm:$0xff]   ;;  %v4069_v15 = vld [vmem:[%s4898_s0 + $0x58] sm:$0xff]   ;;  %v4070_v16 = vld [vmem:[%s4898_s0 + $0x60] sm:$0xff]  }
  0x19   :  { %3498 = vmatpush3.bf16.msra.mxu1 %v4055_v1  ;;  %v4071_v17 = vld [vmem:[%s4898_s0 + $0x68] sm:$0xff]   ;;  %v4072_v18 = vld [vmem:[%s4898_s0 + $0x70] sm:$0xff]   ;;  %v4073_v19 = vld [vmem:[%s4898_s0 + $0x78] sm:$0xff]  }
  0x1a   :  { %3499 = vmatprep.subr.bf16.mxu1 %v4056_v2  ;;  %v4074_v20 = vld [vmem:[%s4898_s0 + $0x80] sm:$0xff]   ;;  %v4075_v21 = vld [vmem:[%s4898_s0 + $0x88] sm:$0xff]   ;;  %v4076_v22 = vld [vmem:[%s4898_s0 + $0x90] sm:$0xff]  }
  0x1b   :  { %v4077_v23 = vld [vmem:[%s4898_s0 + $0x98] sm:$0xff]   ;;  %v4078_v24 = vld [vmem:[%s4898_s0 + $0xa0] sm:$0xff]   ;;  %v4079_v25 = vld [vmem:[%s4898_s0 + $0xa8] sm:$0xff]  }
  0x1c   :  { %v4080_v26 = vld [vmem:[%s4898_s0 + $0xb0] sm:$0xff]   ;;  %v4081_v27 = vld [vmem:[%s4898_s0 + $0xb8] sm:$0xff]   ;;  %v4082_v29 = vld [vmem:[%s4898_s0 + $0xc0] sm:$0xff]  }
  0x1d   :  { %3500 = vmatpush3.bf16.msra.mxu1 %v4056_v2  ;;  %v4083_v30 = vld [vmem:[%s4898_s0 + $0xc8] sm:$0xff]   ;;  %v4084_v31 = vld [vmem:[%s4898_s0 + $0xd0] sm:$0xff]   ;;  %v4085_v32 = vld [vmem:[%s4898_s0 + $0xd8] sm:$0xff]  }
  0x1e   :  { %3501 = vmatprep.subr.bf16.mxu1 %v4057_v4  ;;  %v4086_v33 = vld [vmem:[%s4898_s0 + $0xe0] sm:$0xff]   ;;  %v4087_v34 = vld [vmem:[%s4898_s0 + $0xe8] sm:$0xff]   ;;  %v4088_v35 = vld [vmem:[%s4898_s0 + $0xf0] sm:$0xff]  }
  0x1f   :  { %v4089_v36 = vld [vmem:[%s4898_s0 + $0xf8] sm:$0xff]   ;;  %v4092_v37 = vld [vmem:[#allocation2 + $0x4] ss:$16 sps:$4 sm:$0xff]  }
  0x21   :  { %3502 = vmatpush3.bf16.msra.mxu1 %v4057_v4 }
  0x22   :  { %1488 = vmatprep.subr.bf16.mxu1 %v4469_v28 }
  0x24   :  { %3504 = vmatmul.mubr.msk.bf16.vlgmr.msra.gmra.mrb[0].mxu1 %vm295_vm0, %v4059_v5 }
  0x25   :  { %3507 = vmatprep.mubr.msk.bf16.mxu1 %vm295_vm0, %v4060_v6 }
  0x2c   :  { %3508 = vmatmul.mubr.msk.bf16.gmra.mrb[4].mxu1 %vm295_vm0, %v4061_v7 }
  0x2d   :  { %3511 = vmatprep.mubr.msk.bf16.mxu1 %vm295_vm0, %v4062_v8 }
  0x34   :  { %3512 = vmatmul.mubr.msk.bf16.gmra.mrb[8].mxu1 %vm295_vm0, %v4063_v9 }
  0x35   :  { %3515 = vmatprep.mubr.msk.bf16.mxu1 %vm295_vm0, %v4064_v10 }
  0x3c   :  { %3516 = vmatmul.mubr.msk.bf16.gmra.mrb[12].mxu1 %vm295_vm0, %v4065_v11 }
  0x3d   :  { %3519 = vmatprep.mubr.msk.bf16.mxu1 %vm295_vm0, %v4066_v12 }
  0x44   :  { %3520 = vmatmul.mubr.msk.bf16.gmra.mrb[16].mxu1 %vm295_vm0, %v4067_v13 }
  0x45   :  { %3523 = vmatprep.mubr.msk.bf16.mxu1 %vm295_vm0, %v4068_v14 }
  0x4c   :  { %3524 = vmatmul.mubr.msk.bf16.gmra.mrb[20].mxu1 %vm295_vm0, %v4069_v15 }
  0x4d   :  { %3527 = vmatprep.mubr.msk.bf16.mxu1 %vm295_vm0, %v4070_v16 }
  0x54   :  { %3528 = vmatmul.mubr.msk.bf16.gmra.mrb[24].mxu1 %vm295_vm0, %v4071_v17 }
  0x55   :  { %3531 = vmatprep.mubr.msk.bf16.mxu1 %vm295_vm0, %v4072_v18 }
  0x5c   :  { %3532 = vmatmul.mubr.msk.bf16.gmra.mrb[28].mxu1 %vm295_vm0, %v4073_v19 }
  0x5d   :  { %3535 = vmatprep.mubr.msk.bf16.mxu1 %vm295_vm0, %v4074_v20 }
  0x64   :  { %3536 = vmatmul.mubr.msk.bf16.gmra.mrb[32].mxu1 %vm295_vm0, %v4075_v21 }
  0x65   :  { %3539 = vmatprep.mubr.msk.bf16.mxu1 %vm295_vm0, %v4076_v22 }
  0x6c   :  { %3540 = vmatmul.mubr.msk.bf16.gmra.mrb[36].mxu1 %vm295_vm0, %v4077_v23  ;;  %v4090_v23 = vld [vmem:[#allocation2] ss:$16 sps:$4 sm:$0xff]  }
  0x6d   :  { %3543 = vmatprep.mubr.msk.bf16.mxu1 %vm295_vm0, %v4078_v24 }
  0x74   :  { %3544 = vmatmul.mubr.msk.bf16.gmra.mrb[40].mxu1 %vm295_vm0, %v4079_v25  ;;  %v4093_v25 = vld [vmem:[#allocation2 + $0x24] ss:$16 sps:$4 sm:$0xff]  }
  0x75   :  { %3547 = vmatprep.mubr.msk.bf16.mxu1 %vm295_vm0, %v4080_v26 }
  0x7c   :  { %3548 = vmatmul.mubr.msk.bf16.gmra.mrb[44].mxu1 %vm295_vm0, %v4081_v27 }
  0x7d   :  { %3551 = vmatprep.mubr.msk.bf16.mxu1 %vm295_vm0, %v4082_v29 }
  0x84   :  { %3552 = vmatmul.mubr.msk.bf16.gmra.mrb[48].mxu1 %vm295_vm0, %v4083_v30 }
  0x85   :  { %3555 = vmatprep.mubr.msk.bf16.mxu1 %vm295_vm0, %v4084_v31 }
  0x8c   :  { %3556 = vmatmul.mubr.msk.bf16.gmra.mrb[52].mxu1 %vm295_vm0, %v4085_v32  ;;  %v4095_v32 = vld [vmem:[#allocation2 + $0x20] ss:$16 sps:$4 sm:$0xff]  }
  0x8d   :  { %3559 = vmatprep.mubr.msk.bf16.mxu1 %vm295_vm0, %v4086_v33 }
  0x94   :  { %3560 = vmatmul.mubr.msk.bf16.gmra.mrb[56].mxu1 %vm295_vm0, %v4087_v34  ;;  %v4096_v34 = vld [vmem:[#allocation2 + $0x44] ss:$16 sps:$4 sm:$0xff]  }
  0x95   :  { %3563 = vmatprep.mubr.msk.bf16.mxu1 %vm295_vm0, %v4088_v35 }
  0x9c   :  { %3564 = vmatmul.mubr.msk.bf16.gmra.mrb[60].mxu1 %vm295_vm0, %v4089_v36 }
  0x9d   :  { %1520 = vmatprep.mubr.bf16.mxu1 %v4092_v37 }
  0xf7   :  { %v3505_v38 = vpop.f32.mrb[0].mxu1 }
  0xf8   :  { %v426_v39 = vpop.f32.mrb[1].mxu1 }
  0xf9   :  { %v3506_v40 = vpop.f32.mrb[2].mxu1 }
  0xfa   :  { %v682_v41 = vpack.c.bf16 %v3506_v40, %v3505_v38  ;;  %v429_v42 = vpop.f32.mrb[3].mxu1  ;;  %v4098_v40 = vld [vmem:[#allocation2 + $0x40] ss:$16 sps:$4 sm:$0xff]  }
  0xfb   :  { %v681_v43 = vpack.c.bf16 %v429_v42, %v426_v39  ;;  %v4099_v42 = vld [vmem:[#allocation2 + $0x64] ss:$16 sps:$4 sm:$0xff]  }
  0xfd   :  { %1489 = vmatpush1.bf16.msra.mxu1 %v681_v43 }
  0xfe   :  { %1490 = vmatprep.subr.bf16.mxu1 %v4469_v28 }
  0xff   :  { %v3509_v44 = vpop.f32.mrb[4].mxu1 }
 0x100   :  { %v442_v45 = vpop.f32.mrb[5].mxu1 }
 0x101   :  { %v3510_v46 = vpop.f32.mrb[6].mxu1  ;;  %1491 = vmatpush1.bf16.msra.mxu1 %v682_v41 }
 0x102   :  { %v684_v47 = vpack.c.bf16 %v3510_v46, %v3509_v44  ;;  %v445_v48 = vpop.f32.mrb[7].mxu1  ;;  %1492 = vmatprep.subr.bf16.mxu1 %v4469_v28 }
 0x103   :  { %v683_v49 = vpack.c.bf16 %v445_v48, %v442_v45  ;;  %v4102_v48 = vld [vmem:[#allocation2 + $0x84] ss:$16 sps:$4 sm:$0xff]  }
 0x105   :  { %1493 = vmatpush1.bf16.msra.mxu1 %v683_v49 }
 0x106   :  { %1494 = vmatprep.subr.bf16.mxu1 %v4469_v28 }
 0x107   :  { %v3513_v50 = vpop.f32.mrb[8].mxu1 }
 0x108   :  { %v458_v51 = vpop.f32.mrb[9].mxu1 }
 0x109   :  { %v3514_v52 = vpop.f32.mrb[10].mxu1  ;;  %1495 = vmatpush1.bf16.msra.mxu1 %v684_v47  ;;  %v4101_v47 = vld [vmem:[#allocation2 + $0x60] ss:$16 sps:$4 sm:$0xff]  }
 0x10a   :  { %v686_v53 = vpack.c.bf16 %v3514_v52, %v3513_v50  ;;  %v461_v54 = vpop.f32.mrb[11].mxu1  ;;  %1496 = vmatprep.subr.bf16.mxu1 %v4469_v28 }
 0x10b   :  { %v685_v55 = vpack.c.bf16 %v461_v54, %v458_v51 }
 0x10d   :  { %1497 = vmatpush1.bf16.msra.mxu1 %v685_v55  ;;  %v4104_v55 = vld [vmem:[#allocation2 + $0x80] ss:$16 sps:$4 sm:$0xff]  }
 0x10e   :  { %1498 = vmatprep.subr.bf16.mxu1 %v4469_v28 }
 0x10f   :  { %v3517_v56 = vpop.f32.mrb[12].mxu1 }
 0x110   :  { %v474_v57 = vpop.f32.mrb[13].mxu1 }
 0x111   :  { %v3518_v58 = vpop.f32.mrb[14].mxu1  ;;  %1499 = vmatpush1.bf16.msra.mxu1 %v686_v53 }
 0x112   :  { %v688_v59 = vpack.c.bf16 %v3518_v58, %v3517_v56  ;;  %v477_v60 = vpop.f32.mrb[15].mxu1  ;;  %1500 = vmatprep.subr.bf16.mxu1 %v4469_v28  ;;  %v4105_v56 = vld [vmem:[#allocation2 + $0xa4] ss:$16 sps:$4 sm:$0xff]  }
 0x113   :  { %v687_v61 = vpack.c.bf16 %v477_v60, %v474_v57  ;;  %v4107_v57 = vld [vmem:[#allocation2 + $0xa0] ss:$16 sps:$4 sm:$0xff]   ;;  %v4108_v58 = vld [vmem:[#allocation2 + $0xc4] ss:$16 sps:$4 sm:$0xff]  }
 0x115   :  { %1501 = vmatpush1.bf16.msra.mxu1 %v687_v61  ;;  %v4111_v61 = vld [vmem:[#allocation2 + $0xe4] ss:$16 sps:$4 sm:$0xff]  }
 0x116   :  { %1502 = vmatprep.subr.bf16.mxu1 %v4469_v28 }
 0x117   :  { %v3521_v62 = vpop.f32.mrb[16].mxu1 }
 0x118   :  { %v490_v63 = vpop.f32.mrb[17].mxu1 }
 0x119   :  { %v3522_v0 = vpop.f32.mrb[18].mxu1  ;;  %1503 = vmatpush1.bf16.msra.mxu1 %v688_v59  ;;  %v4110_v59 = vld [vmem:[#allocation2 + $0xc0] ss:$16 sps:$4 sm:$0xff]  }
 0x11a   :  { %v690_v1 = vpack.c.bf16 %v3522_v0, %v3521_v62  ;;  %v493_v2 = vpop.f32.mrb[19].mxu1  ;;  %1504 = vmatprep.subr.bf16.mxu1 %v4469_v28 }
 0x11b   :  { %v689_v3 = vpack.c.bf16 %v493_v2, %v490_v63 }
 0x11d   :  { %1505 = vmatpush1.bf16.msra.mxu1 %v689_v3  ;;  %v4113_v3 = vld [vmem:[#allocation2 + $0xe0] ss:$16 sps:$4 sm:$0xff]  }
 0x11e   :  { %1506 = vmatprep.subr.bf16.mxu1 %v4469_v28 }
 0x11f   :  { %v3525_v4 = vpop.f32.mrb[20].mxu1 }
 0x120   :  { %v506_v5 = vpop.f32.mrb[21].mxu1 }
 0x121   :  { %v3526_v6 = vpop.f32.mrb[22].mxu1  ;;  %1507 = vmatpush1.bf16.msra.mxu1 %v690_v1 }
 0x122   :  { %v692_v7 = vpack.c.bf16 %v3526_v6, %v3525_v4  ;;  %v509_v8 = vpop.f32.mrb[23].mxu1  ;;  %1508 = vmatprep.subr.bf16.mxu1 %v4469_v28 }
 0x123   :  { %v691_v9 = vpack.c.bf16 %v509_v8, %v506_v5  ;;  %v4114_v5 = vld [vmem:[#allocation2 + $0x104] ss:$16 sps:$4 sm:$0xff]  }
 0x125   :  { %1509 = vmatpush1.bf16.msra.mxu1 %v691_v9 }
 0x126   :  { %1510 = vmatprep.subr.bf16.mxu1 %v4469_v28 }
 0x127   :  { %v3529_v10 = vpop.f32.mrb[24].mxu1 }
 0x128   :  { %v522_v11 = vpop.f32.mrb[25].mxu1 }
 0x129   :  { %v3530_v12 = vpop.f32.mrb[26].mxu1  ;;  %1511 = vmatpush1.bf16.msra.mxu1 %v692_v7 }
 0x12a   :  { %v694_v13 = vpack.c.bf16 %v3530_v12, %v3529_v10  ;;  %v525_v14 = vpop.f32.mrb[27].mxu1  ;;  %1512 = vmatprep.subr.bf16.mxu1 %v4469_v28  ;;  %v4116_v10 = vld [vmem:[#allocation2 + $0x100] ss:$16 sps:$4 sm:$0xff]  }
 0x12b   :  { %v693_v15 = vpack.c.bf16 %v525_v14, %v522_v11 }
 0x12d   :  { %1513 = vmatpush1.bf16.msra.mxu1 %v693_v15 }
 0x12e   :  { %1514 = vmatprep.subr.bf16.mxu1 %v4469_v28 }
 0x12f   :  { %v3533_v16 = vpop.f32.mrb[28].mxu1 }
 0x130   :  { %v538_v17 = vpop.f32.mrb[29].mxu1 }
 0x131   :  { %v3534_v18 = vpop.f32.mrb[30].mxu1  ;;  %1515 = vmatpush1.bf16.msra.mxu1 %v694_v13  ;;  %v4117_v13 = vld [vmem:[#allocation2 + $0x124] ss:$16 sps:$4 sm:$0xff]  }
 0x132   :  { %v696_v19 = vpack.c.bf16 %v3534_v18, %v3533_v16  ;;  %v541_v20 = vpop.f32.mrb[31].mxu1  ;;  %1516 = vmatprep.subr.bf16.mxu1 %v4469_v28  ;;  %v4119_v18 = vld [vmem:[#allocation2 + $0x120] ss:$16 sps:$4 sm:$0xff]  }
 0x133   :  { %v695_v21 = vpack.c.bf16 %v541_v20, %v538_v17 }
 0x135   :  { %1517 = vmatpush1.bf16.msra.mxu1 %v695_v21  ;;  %v4120_v21 = vld [vmem:[#allocation2 + $0x144] ss:$16 sps:$4 sm:$0xff]  }
 0x136   :  { %1518 = vmatprep.subr.bf16.mxu1 %v4469_v28 }
 0x137   :  { %v3537_v22 = vpop.f32.mrb[32].mxu1 }
 0x138   :  { %v554_v24 = vpop.f32.mrb[33].mxu1 }
 0x139   :  { %1519 = vmatpush1.bf16.msra.mxu1 %v696_v19  ;;  %v3538_v26 = vpop.f32.mrb[34].mxu1 }
 0x13a   :  { %v698_v27 = vpack.c.bf16 %v3538_v26, %v3537_v22  ;;  %v557_v29 = vpop.f32.mrb[35].mxu1  ;;  %1777 = vmatprep.subr.bf16.mxu1 %v4469_v28  ;;  %v4122_v26 = vld [vmem:[#allocation2 + $0x140] ss:$16 sps:$4 sm:$0xff]  }
 0x13b   :  { %v697_v30 = vpack.c.bf16 %v557_v29, %v554_v24  ;;  %v4123_v29 = vld [vmem:[#allocation2 + $0x164] ss:$16 sps:$4 sm:$0xff]  }
 0x13c   :  { %1521 = vmatmul.mubr.bf16.vlgmr.msra.gmra.mrb[64].mxu1 %v4090_v23 }
 0x13d   :  { %1528 = vmatprep.mubr.bf16.mxu1 %v4093_v25  ;;  %1778 = vmatpush1.bf16.msra.mxu1 %v697_v30  ;;  %v4125_v30 = vld [vmem:[#allocation2 + $0x160] ss:$16 sps:$4 sm:$0xff]  }
 0x13e   :  { %1779 = vmatprep.subr.bf16.mxu1 %v4469_v28 }
 0x13f   :  { %v3541_v31 = vpop.f32.mrb[36].mxu1 }
 0x140   :  { %v570_v33 = vpop.f32.mrb[37].mxu1 }
 0x141   :  { %1780 = vmatpush1.bf16.msra.mxu1 %v698_v27  ;;  %v3542_v35 = vpop.f32.mrb[38].mxu1 }
 0x142   :  { %v700_v36 = vpack.c.bf16 %v3542_v35, %v3541_v31  ;;  %v573_v37 = vpop.f32.mrb[39].mxu1  ;;  %1781 = vmatprep.subr.bf16.mxu1 %v4469_v28  ;;  %v4126_v31 = vld [vmem:[#allocation2 + $0x184] ss:$16 sps:$4 sm:$0xff]  }
 0x143   :  { %v699_v38 = vpack.c.bf16 %v573_v37, %v570_v33  ;;  %v4129_v33 = vld [vmem:[#allocation2 + $0x1a4] ss:$16 sps:$4 sm:$0xff]  }
 0x144   :  { %1529 = vmatmul.mubr.bf16.gmra.mrb[68].mxu1 %v4095_v32  ;;  %v4128_v32 = vld [vmem:[#allocation2 + $0x180] ss:$16 sps:$4 sm:$0xff]   ;;  %v4132_v35 = vld [vmem:[#allocation2 + $0x1c4] ss:$16 sps:$4 sm:$0xff]  }
 0x145   :  { %1536 = vmatprep.mubr.bf16.mxu1 %v4096_v34  ;;  %1782 = vmatpush1.bf16.msra.mxu1 %v699_v38  ;;  %v4131_v34 = vld [vmem:[#allocation2 + $0x1a0] ss:$16 sps:$4 sm:$0xff]   ;;  %v4135_v37 = vld [vmem:[#allocation2 + $0x1e4] ss:$16 sps:$4 sm:$0xff]  }
 0x146   :  { %1783 = vmatprep.subr.bf16.mxu1 %v4469_v28  ;;  %v4137_v38 = vld [vmem:[#allocation2 + $0x1e0] ss:$16 sps:$4 sm:$0xff]  }
 0x147   :  { %v3545_v39 = vpop.f32.mrb[40].mxu1 }
 0x148   :  { %v586_v41 = vpop.f32.mrb[41].mxu1 }
 0x149   :  { %1784 = vmatpush1.bf16.msra.mxu1 %v700_v36  ;;  %v3546_v43 = vpop.f32.mrb[42].mxu1  ;;  %v4134_v36 = vld [vmem:[#allocation2 + $0x1c0] ss:$16 sps:$4 sm:$0xff]  }
 0x14a   :  { %v702_v44 = vpack.c.bf16 %v3546_v43, %v3545_v39  ;;  %v589_v45 = vpop.f32.mrb[43].mxu1  ;;  %1785 = vmatprep.subr.bf16.mxu1 %v4469_v28  ;;  %v4138_v39 = vld [vmem:[#allocation2 + $0x204] ss:$16 sps:$4 sm:$0xff]  }
 0x14b   :  { %v701_v46 = vpack.c.bf16 %v589_v45, %v586_v41  ;;  %v4141_v41 = vld [vmem:[#allocation2 + $0x224] ss:$16 sps:$4 sm:$0xff]  }
 0x14c   :  { %1537 = vmatmul.mubr.bf16.gmra.mrb[72].mxu1 %v4098_v40  ;;  %v4140_v40 = vld [vmem:[#allocation2 + $0x200] ss:$16 sps:$4 sm:$0xff]   ;;  %v4144_v43 = vld [vmem:[#allocation2 + $0x244] ss:$16 sps:$4 sm:$0xff]  }
 0x14d   :  { %1544 = vmatprep.mubr.bf16.mxu1 %v4099_v42  ;;  %1786 = vmatpush1.bf16.msra.mxu1 %v701_v46  ;;  %v4143_v42 = vld [vmem:[#allocation2 + $0x220] ss:$16 sps:$4 sm:$0xff]   ;;  %v4147_v45 = vld [vmem:[#allocation2 + $0x264] ss:$16 sps:$4 sm:$0xff]  }
 0x14e   :  { %1787 = vmatprep.subr.bf16.mxu1 %v4469_v28  ;;  %v4149_v46 = vld [vmem:[#allocation2 + $0x260] ss:$16 sps:$4 sm:$0xff]  }
 0x14f   :  { %v3549_v49 = vpop.f32.mrb[44].mxu1 }
 0x150   :  { %v602_v50 = vpop.f32.mrb[45].mxu1 }
 0x151   :  { %1788 = vmatpush1.bf16.msra.mxu1 %v702_v44  ;;  %v3550_v51 = vpop.f32.mrb[46].mxu1  ;;  %v4146_v44 = vld [vmem:[#allocation2 + $0x240] ss:$16 sps:$4 sm:$0xff]  }
 0x152   :  { %1789 = vmatprep.subr.bf16.mxu1 %v4469_v28  ;;  %v704_v52 = vpack.c.bf16 %v3550_v51, %v3549_v49  ;;  %v605_v53 = vpop.f32.mrb[47].mxu1  ;;  %v4153_v49 = vld [vmem:[#allocation2 + $0x2a4] ss:$16 sps:$4 sm:$0xff]  }
 0x153   :  { %v703_v54 = vpack.c.bf16 %v605_v53, %v602_v50  ;;  %v4155_v50 = vld [vmem:[#allocation2 + $0x2a0] ss:$16 sps:$4 sm:$0xff]   ;;  %v4156_v51 = vld [vmem:[#allocation2 + $0x2c4] ss:$16 sps:$4 sm:$0xff]  }
 0x154   :  { %1545 = vmatmul.mubr.bf16.gmra.mrb[76].mxu1 %v4101_v47  ;;  %v4150_v47 = vld [vmem:[#allocation2 + $0x284] ss:$16 sps:$4 sm:$0xff]  }
 0x155   :  { %1552 = vmatprep.mubr.bf16.mxu1 %v4102_v48  ;;  %1790 = vmatpush1.bf16.msra.mxu1 %v703_v54  ;;  %v4152_v48 = vld [vmem:[#allocation2 + $0x280] ss:$16 sps:$4 sm:$0xff]   ;;  %v4159_v53 = vld [vmem:[#allocation2 + $0x2e4] ss:$16 sps:$4 sm:$0xff]  }
 0x156   :  { %1791 = vmatprep.subr.bf16.mxu1 %v4469_v28  ;;  %v4161_v54 = vld [vmem:[#allocation2 + $0x2e0] ss:$16 sps:$4 sm:$0xff]  }
 0x157   :  { %v3553_v60 = vpop.f32.mrb[48].mxu1 }
 0x158   :  { %v618_v62 = vpop.f32.mrb[49].mxu1 }
 0x159   :  { %1792 = vmatpush1.bf16.msra.mxu1 %v704_v52  ;;  %v3554_v63 = vpop.f32.mrb[50].mxu1  ;;  %v4158_v52 = vld [vmem:[#allocation2 + $0x2c0] ss:$16 sps:$4 sm:$0xff]  }
 0x15a   :  { %1793 = vmatprep.subr.bf16.mxu1 %v4469_v28  ;;  %v621_v0 = vpop.f32.mrb[51].mxu1  ;;  %v706_v1 = vpack.c.bf16 %v3554_v63, %v3553_v60  ;;  %v4170_v60 = vld [vmem:[#allocation2 + $0x340] ss:$16 sps:$4 sm:$0xff]   ;;  %v4174_v63 = vld [vmem:[#allocation2 + $0x384] ss:$16 sps:$4 sm:$0xff]  }
 0x15b   :  { %v705_v2 = vpack.c.bf16 %v621_v0, %v618_v62  ;;  %v4173_v62 = vld [vmem:[#allocation2 + $0x360] ss:$16 sps:$4 sm:$0xff]  }
 0x15c   :  { %1553 = vmatmul.mubr.bf16.gmra.mrb[80].mxu1 %v4104_v55  ;;  %v4162_v55 = vld [vmem:[#allocation2 + $0x304] ss:$16 sps:$4 sm:$0xff]   ;;  %v4176_v0 = vld [vmem:[#allocation2 + $0x380] ss:$16 sps:$4 sm:$0xff]  }
 0x15d   :  { %1560 = vmatprep.mubr.bf16.mxu1 %v4105_v56  ;;  %1794 = vmatpush1.bf16.msra.mxu1 %v705_v2  ;;  %v4164_v56 = vld [vmem:[#allocation2 + $0x300] ss:$16 sps:$4 sm:$0xff]  }
 0x15e   :  { %1795 = vmatprep.subr.bf16.mxu1 %v4469_v28  ;;  %v4179_v2 = vld [vmem:[#allocation2 + $0x3a0] ss:$16 sps:$4 sm:$0xff]  }
 0x15f   :  { %v3557_v4 = vpop.f32.mrb[52].mxu1 }
 0x160   :  { %v634_v6 = vpop.f32.mrb[53].mxu1 }
 0x161   :  { %1796 = vmatpush1.bf16.msra.mxu1 %v706_v1  ;;  %v3558_v7 = vpop.f32.mrb[54].mxu1  ;;  %v4177_v1 = vld [vmem:[#allocation2 + $0x3a4] ss:$16 sps:$4 sm:$0xff]  }
 0x162   :  { %v637_v8 = vpop.f32.mrb[55].mxu1  ;;  %1797 = vmatprep.subr.bf16.mxu1 %v4469_v28  ;;  %v708_v11 = vpack.c.bf16 %v3558_v7, %v3557_v4  ;;  %v4182_v4 = vld [vmem:[#allocation2 + $0x3c0] ss:$16 sps:$4 sm:$0xff]   ;;  %v4188_v7 = vld [vmem:[#allocation2 + $0xc] ss:$16 sps:$4 sm:$0xff]  }
 0x163   :  { %v707_v9 = vpack.c.bf16 %v637_v8, %v634_v6  ;;  %v4185_v6 = vld [vmem:[#allocation2 + $0x3e0] ss:$16 sps:$4 sm:$0xff]   ;;  %v4186_v8 = vld [vmem:[#allocation2 + $0x8] ss:$16 sps:$4 sm:$0xff]  }
 0x164   :  { %1561 = vmatmul.mubr.bf16.gmra.mrb[84].mxu1 %v4107_v57  ;;  %v4165_v57 = vld [vmem:[#allocation2 + $0x324] ss:$16 sps:$4 sm:$0xff]  }
 0x165   :  { %1568 = vmatprep.mubr.bf16.mxu1 %v4108_v58  ;;  %1798 = vmatpush1.bf16.msra.mxu1 %v707_v9  ;;  %v4167_v58 = vld [vmem:[#allocation2 + $0x320] ss:$16 sps:$4 sm:$0xff]   ;;  %v4189_v9 = vld [vmem:[#allocation2 + $0x2c] ss:$16 sps:$4 sm:$0xff]  }
 0x166   :  { %1799 = vmatprep.subr.bf16.mxu1 %v4469_v28 }
 0x167   :  { %v3561_v12 = vpop.f32.mrb[56].mxu1 }
 0x168   :  { %v650_v14 = vpop.f32.mrb[57].mxu1 }
 0x169   :  { %1800 = vmatpush1.bf16.msra.mxu1 %v708_v11  ;;  %v3562_v15 = vpop.f32.mrb[58].mxu1  ;;  %v4192_v11 = vld [vmem:[#allocation2 + $0x4c] ss:$16 sps:$4 sm:$0xff]  }
 0x16a   :  { %v653_v16 = vpop.f32.mrb[59].mxu1  ;;  %1801 = vmatprep.subr.bf16.mxu1 %v4469_v28  ;;  %v710_v19 = vpack.c.bf16 %v3562_v15, %v3561_v12  ;;  %v4194_v12 = vld [vmem:[#allocation2 + $0x48] ss:$16 sps:$4 sm:$0xff]   ;;  %v4198_v15 = vld [vmem:[#allocation2 + $0x8c] ss:$16 sps:$4 sm:$0xff]  }
 0x16b   :  { %v709_v17 = vpack.c.bf16 %v653_v16, %v650_v14  ;;  %v4197_v14 = vld [vmem:[#allocation2 + $0x68] ss:$16 sps:$4 sm:$0xff]  }
 0x16c   :  { %1569 = vmatmul.mubr.bf16.gmra.mrb[88].mxu1 %v4110_v59  ;;  %v4168_v59 = vld [vmem:[#allocation2 + $0x344] ss:$16 sps:$4 sm:$0xff]   ;;  %v4200_v16 = vld [vmem:[#allocation2 + $0x88] ss:$16 sps:$4 sm:$0xff]  }
 0x16d   :  { %1576 = vmatprep.mubr.bf16.mxu1 %v4111_v61  ;;  %1802 = vmatpush1.bf16.msra.mxu1 %v709_v17  ;;  %v4171_v61 = vld [vmem:[#allocation2 + $0x364] ss:$16 sps:$4 sm:$0xff]   ;;  %v4201_v17 = vld [vmem:[#allocation2 + $0xac] ss:$16 sps:$4 sm:$0xff]  }
 0x16e   :  { %1803 = vmatprep.subr.bf16.mxu1 %v4469_v28 }
 0x16f   :  { %v3565_v20 = vpop.f32.mrb[60].mxu1 }
 0x170   :  { %v666_v22 = vpop.f32.mrb[61].mxu1 }
 0x171   :  { %v3566_v23 = vpop.f32.mrb[62].mxu1  ;;  %1804 = vmatpush1.bf16.msra.mxu1 %v710_v19  ;;  %v4204_v19 = vld [vmem:[#allocation2 + $0xcc] ss:$16 sps:$4 sm:$0xff]  }
 0x172   :  { %v669_v24 = vpop.f32.mrb[63].mxu1  ;;  %1805 = vmatprep.subr.bf16.mxu1 %v4469_v28  ;;  %v712_v27 = vpack.c.bf16 %v3566_v23, %v3565_v20  ;;  %v4206_v20 = vld [vmem:[#allocation2 + $0xc8] ss:$16 sps:$4 sm:$0xff]   ;;  %v4210_v23 = vld [vmem:[#allocation2 + $0x10c] ss:$16 sps:$4 sm:$0xff]  }
 0x173   :  { %v711_v25 = vpack.c.bf16 %v669_v24, %v666_v22  ;;  %v4209_v22 = vld [vmem:[#allocation2 + $0xe8] ss:$16 sps:$4 sm:$0xff]  }
 0x174   :  { %1577 = vmatmul.mubr.bf16.gmra.mrb[92].mxu1 %v4113_v3  ;;  %v4180_v3 = vld [vmem:[#allocation2 + $0x3c4] ss:$16 sps:$4 sm:$0xff]   ;;  %v4212_v24 = vld [vmem:[#allocation2 + $0x108] ss:$16 sps:$4 sm:$0xff]  }
 0x175   :  { %1584 = vmatprep.mubr.bf16.mxu1 %v4114_v5  ;;  %1806 = vmatpush1.bf16.msra.mxu1 %v711_v25  ;;  %v4183_v5 = vld [vmem:[#allocation2 + $0x3e4] ss:$16 sps:$4 sm:$0xff]   ;;  %v4213_v25 = vld [vmem:[#allocation2 + $0x12c] ss:$16 sps:$4 sm:$0xff]  }
 0x176   :  { %1807 = vmatprep.subr.bf16.mxu1 %v4469_v28 }
 0x179   :  { %1808 = vmatpush1.bf16.msra.mxu1 %v712_v27  ;;  %v4215_v27 = vld [vmem:[#allocation2 + $0x128] ss:$16 sps:$4 sm:$0xff]  }
 0x17c   :  { %1585 = vmatmul.mubr.bf16.gmra.mrb[96].mxu1 %v4116_v10  ;;  %v4191_v10 = vld [vmem:[#allocation2 + $0x28] ss:$16 sps:$4 sm:$0xff]  }
 0x17d   :  { %1592 = vmatprep.mubr.bf16.mxu1 %v4117_v13  ;;  %v4195_v13 = vld [vmem:[#allocation2 + $0x6c] ss:$16 sps:$4 sm:$0xff]  }
 0x184   :  { %1593 = vmatmul.mubr.bf16.gmra.mrb[100].mxu1 %v4119_v18  ;;  %v4203_v18 = vld [vmem:[#allocation2 + $0xa8] ss:$16 sps:$4 sm:$0xff]  }
 0x185   :  { %1600 = vmatprep.mubr.bf16.mxu1 %v4120_v21  ;;  %v4207_v21 = vld [vmem:[#allocation2 + $0xec] ss:$16 sps:$4 sm:$0xff]  }
 0x18c   :  { %1601 = vmatmul.mubr.bf16.gmra.mrb[104].mxu1 %v4122_v26  ;;  %v4261_v26 = vld [vmem:[%s4902_s4] sm:$0xff]  }
 0x18d   :  { %1608 = vmatprep.mubr.bf16.mxu1 %v4123_v29  ;;  %3567 = vmatprep.subr.bf16.mxu0 %v4261_v26  ;;  %v4216_v29 = vld [vmem:[#allocation2 + $0x14c] ss:$16 sps:$4 sm:$0xff]  }
 0x18e   :  { %3647 = vmatprep.subr.bf16.mxu1 %v4261_v26  ;;  %3568 = vmatpush3.bf16.msra.mxu0 %v4261_v26 }
 0x194   :  { %1609 = vmatmul.mubr.bf16.gmra.mrb[108].mxu1 %v4125_v30  ;;  %v4265_v30 = vld [vmem:[%s4902_s4 + $0x8] sm:$0xff]  }
 0x195   :  { %1616 = vmatprep.mubr.bf16.mxu1 %v4126_v31  ;;  %3569 = vmatprep.subr.bf16.mxu0 %v4265_v30  ;;  %v4266_v31 = vld [vmem:[%s4902_s4 + $0x10] sm:$0xff]  }
 0x196   :  { %3570 = vmatpush3.bf16.msra.mxu0 %v4265_v30 }
 0x197   :  { %3571 = vmatprep.subr.bf16.mxu0 %v4266_v31 }
 0x19a   :  { %3572 = vmatpush3.bf16.msra.mxu0 %v4266_v31 }
 0x19c   :  { %1617 = vmatmul.mubr.bf16.gmra.mrb[112].mxu1 %v4128_v32  ;;  %v4218_v32 = vld [vmem:[#allocation2 + $0x148] ss:$16 sps:$4 sm:$0xff]  }
 0x19d   :  { %1624 = vmatprep.mubr.bf16.mxu1 %v4129_v33  ;;  %v4219_v33 = vld [vmem:[#allocation2 + $0x16c] ss:$16 sps:$4 sm:$0xff]  }
 0x1a4   :  { %1625 = vmatmul.mubr.bf16.gmra.mrb[116].mxu1 %v4131_v34  ;;  %v4270_v34 = vld [vmem:[%s4902_s4 + $0x18] sm:$0xff]  }
 0x1a5   :  { %1632 = vmatprep.mubr.bf16.mxu1 %v4132_v35  ;;  %3573 = vmatprep.subr.bf16.mxu0 %v4270_v34  ;;  %v4271_v35 = vld [vmem:[%s4902_s4 + $0x20] sm:$0xff]  }
 0x1a6   :  { %3574 = vmatpush3.bf16.msra.mxu0 %v4270_v34 }
 0x1a7   :  { %3575 = vmatprep.subr.bf16.mxu0 %v4271_v35 }
 0x1aa   :  { %3576 = vmatpush3.bf16.msra.mxu0 %v4271_v35 }
 0x1ac   :  { %1633 = vmatmul.mubr.bf16.gmra.mrb[120].mxu1 %v4134_v36  ;;  %v4221_v36 = vld [vmem:[#allocation2 + $0x168] ss:$16 sps:$4 sm:$0xff]  }
 0x1ad   :  { %1640 = vmatprep.mubr.bf16.mxu1 %v4135_v37  ;;  %v4222_v37 = vld [vmem:[#allocation2 + $0x18c] ss:$16 sps:$4 sm:$0xff]  }
 0x1b4   :  { %1641 = vmatmul.mubr.bf16.gmra.mrb[124].mxu1 %v4137_v38  ;;  %v4275_v38 = vld [vmem:[%s4902_s4 + $0x28] sm:$0xff]  }
 0x1b5   :  { %1648 = vmatprep.mubr.bf16.mxu1 %v4138_v39  ;;  %3577 = vmatprep.subr.bf16.mxu0 %v4275_v38  ;;  %v4276_v39 = vld [vmem:[%s4902_s4 + $0x30] sm:$0xff]  }
 0x1b6   :  { %3578 = vmatpush3.bf16.msra.mxu0 %v4275_v38 }
 0x1b7   :  { %3579 = vmatprep.subr.bf16.mxu0 %v4276_v39 }
 0x1ba   :  { %3580 = vmatpush3.bf16.msra.mxu0 %v4276_v39 }
 0x1bc   :  { %1649 = vmatmul.mubr.bf16.gmra.mrb[128].mxu1 %v4140_v40  ;;  %v4224_v40 = vld [vmem:[#allocation2 + $0x188] ss:$16 sps:$4 sm:$0xff]  }
 0x1bd   :  { %1656 = vmatprep.mubr.bf16.mxu1 %v4141_v41  ;;  %v4225_v41 = vld [vmem:[#allocation2 + $0x1ac] ss:$16 sps:$4 sm:$0xff]  }
 0x1c4   :  { %1657 = vmatmul.mubr.bf16.gmra.mrb[132].mxu1 %v4143_v42  ;;  %v4280_v42 = vld [vmem:[%s4902_s4 + $0x38] sm:$0xff]  }
 0x1c5   :  { %1664 = vmatprep.mubr.bf16.mxu1 %v4144_v43  ;;  %3581 = vmatprep.subr.bf16.mxu0 %v4280_v42  ;;  %v4227_v43 = vld [vmem:[#allocation2 + $0x1a8] ss:$16 sps:$4 sm:$0xff]  }
 0x1c6   :  { %3582 = vmatpush3.bf16.msra.mxu0 %v4280_v42 }
 0x1c7   :  { %2554 = vmatprep.subr.bf16.mxu0 %v4469_v28 }
 0x1cc   :  { %1665 = vmatmul.mubr.bf16.gmra.mrb[136].mxu1 %v4146_v44  ;;  %v4228_v44 = vld [vmem:[#allocation2 + $0x1cc] ss:$16 sps:$4 sm:$0xff]  }
 0x1cd   :  { %1672 = vmatprep.mubr.bf16.mxu1 %v4147_v45  ;;  %v4230_v45 = vld [vmem:[#allocation2 + $0x1c8] ss:$16 sps:$4 sm:$0xff]  }
 0x1d4   :  { %1673 = vmatmul.mubr.bf16.gmra.mrb[140].mxu1 %v4149_v46  ;;  %v4231_v46 = vld [vmem:[#allocation2 + $0x1ec] ss:$16 sps:$4 sm:$0xff]  }
 0x1d5   :  { %1680 = vmatprep.mubr.bf16.mxu1 %v4150_v47  ;;  %v4233_v47 = vld [vmem:[#allocation2 + $0x1e8] ss:$16 sps:$4 sm:$0xff]  }
 0x1dc   :  { %1681 = vmatmul.mubr.bf16.gmra.mrb[144].mxu1 %v4152_v48  ;;  %v4234_v48 = vld [vmem:[#allocation2 + $0x20c] ss:$16 sps:$4 sm:$0xff]  }
 0x1dd   :  { %1688 = vmatprep.mubr.bf16.mxu1 %v4153_v49  ;;  %v4236_v49 = vld [vmem:[#allocation2 + $0x208] ss:$16 sps:$4 sm:$0xff]  }
 0x1e4   :  { %1689 = vmatmul.mubr.bf16.gmra.mrb[148].mxu1 %v4155_v50  ;;  %v4237_v50 = vld [vmem:[#allocation2 + $0x22c] ss:$16 sps:$4 sm:$0xff]  }
 0x1e5   :  { %1696 = vmatprep.mubr.bf16.mxu1 %v4156_v51  ;;  %v4239_v51 = vld [vmem:[#allocation2 + $0x228] ss:$16 sps:$4 sm:$0xff]  }
 0x1ec   :  { %1697 = vmatmul.mubr.bf16.gmra.mrb[152].mxu1 %v4158_v52  ;;  %v4240_v52 = vld [vmem:[#allocation2 + $0x24c] ss:$16 sps:$4 sm:$0xff]  }
 0x1ed   :  { %1704 = vmatprep.mubr.bf16.mxu1 %v4159_v53  ;;  %v4242_v53 = vld [vmem:[#allocation2 + $0x248] ss:$16 sps:$4 sm:$0xff]  }
 0x1f4   :  { %1705 = vmatmul.mubr.bf16.gmra.mrb[156].mxu1 %v4161_v54  ;;  %v4243_v54 = vld [vmem:[#allocation2 + $0x26c] ss:$16 sps:$4 sm:$0xff]  }
 0x1f5   :  { %1712 = vmatprep.mubr.bf16.mxu1 %v4162_v55  ;;  %v4245_v55 = vld [vmem:[#allocation2 + $0x268] ss:$16 sps:$4 sm:$0xff]  }
 0x1fc   :  { %1713 = vmatmul.mubr.bf16.gmra.mrb[160].mxu1 %v4164_v56  ;;  %v4246_v56 = vld [vmem:[#allocation2 + $0x28c] ss:$16 sps:$4 sm:$0xff]  }
 0x1fd   :  { %1720 = vmatprep.mubr.bf16.mxu1 %v4165_v57  ;;  %v4248_v57 = vld [vmem:[#allocation2 + $0x288] ss:$16 sps:$4 sm:$0xff]  }
 0x204   :  { %1721 = vmatmul.mubr.bf16.gmra.mrb[164].mxu1 %v4167_v58  ;;  %v4249_v58 = vld [vmem:[#allocation2 + $0x2ac] ss:$16 sps:$4 sm:$0xff]  }
 0x205   :  { %1728 = vmatprep.mubr.bf16.mxu1 %v4168_v59  ;;  %v4251_v59 = vld [vmem:[#allocation2 + $0x2a8] ss:$16 sps:$4 sm:$0xff]  }
 0x20c   :  { %1729 = vmatmul.mubr.bf16.gmra.mrb[168].mxu1 %v4170_v60  ;;  %v4252_v60 = vld [vmem:[#allocation2 + $0x2cc] ss:$16 sps:$4 sm:$0xff]  }
 0x20d   :  { %1736 = vmatprep.mubr.bf16.mxu1 %v4171_v61  ;;  %v4254_v61 = vld [vmem:[#allocation2 + $0x2c8] ss:$16 sps:$4 sm:$0xff]  }
 0x214   :  { %1737 = vmatmul.mubr.bf16.gmra.mrb[172].mxu1 %v4173_v62  ;;  %v4255_v62 = vld [vmem:[#allocation2 + $0x2ec] ss:$16 sps:$4 sm:$0xff]  }
 0x215   :  { %1744 = vmatprep.mubr.bf16.mxu1 %v4174_v63  ;;  %v4257_v63 = vld [vmem:[#allocation2 + $0x2e8] ss:$16 sps:$4 sm:$0xff]  }
 0x21c   :  { %1745 = vmatmul.mubr.bf16.gmra.mrb[176].mxu1 %v4176_v0  ;;  %v4258_v0 = vld [vmem:[#allocation2 + $0x30c] ss:$16 sps:$4 sm:$0xff]  }
 0x21d   :  { %1752 = vmatprep.mubr.bf16.mxu1 %v4177_v1  ;;  %v4260_v1 = vld [vmem:[#allocation2 + $0x308] ss:$16 sps:$4 sm:$0xff]  }
 0x224   :  { %1753 = vmatmul.mubr.bf16.gmra.mrb[180].mxu1 %v4179_v2  ;;  %v4262_v2 = vld [vmem:[#allocation2 + $0x32c] ss:$16 sps:$4 sm:$0xff]  }
 0x225   :  { %1760 = vmatprep.mubr.bf16.mxu1 %v4180_v3  ;;  %v4264_v3 = vld [vmem:[#allocation2 + $0x328] ss:$16 sps:$4 sm:$0xff]  }
 0x22c   :  { %1761 = vmatmul.mubr.bf16.gmra.mrb[184].mxu1 %v4182_v4  ;;  %v4267_v4 = vld [vmem:[#allocation2 + $0x34c] ss:$16 sps:$4 sm:$0xff]  }
 0x22d   :  { %1768 = vmatprep.mubr.bf16.mxu1 %v4183_v5  ;;  %v4269_v5 = vld [vmem:[#allocation2 + $0x348] ss:$16 sps:$4 sm:$0xff]  }
 0x234   :  { %1769 = vmatmul.mubr.bf16.gmra.mrb[188].mxu1 %v4185_v6  ;;  %v4272_v6 = vld [vmem:[#allocation2 + $0x36c] ss:$16 sps:$4 sm:$0xff]  }
 0x235   :  { %1809 = vmatprep.mubr.bf16.mxu1 %v4188_v7  ;;  %v4720_v7 = vld [vmem:[%s4901_s3] ss:$0 sm:$0xff] }
 0x23c   :  { %1810 = vmatmul.mubr.bf16.vlgmr.msra.gmra.mrb[64].mxu1 %v4186_v8 }
 0x23d   :  { %1817 = vmatprep.mubr.bf16.mxu1 %v4189_v9  ;;  %3655 = vmatpush3.bf16.msra.mxu1 %v4261_v26 }
 0x23e   :  { %3648 = vmatprep.subr.bf16.mxu1 %v4265_v30 }
 0x241   :  { %3656 = vmatpush3.bf16.msra.mxu1 %v4265_v30 }
 0x242   :  { %3649 = vmatprep.subr.bf16.mxu1 %v4266_v31 }
 0x244   :  { %1818 = vmatmul.mubr.bf16.gmra.mrb[68].mxu1 %v4191_v10 }
 0x245   :  { %1825 = vmatprep.mubr.bf16.mxu1 %v4192_v11  ;;  %3657 = vmatpush3.bf16.msra.mxu1 %v4266_v31  ;;  %v4274_v11 = vld [vmem:[#allocation2 + $0x368] ss:$16 sps:$4 sm:$0xff]  }
 0x246   :  { %3650 = vmatprep.subr.bf16.mxu1 %v4270_v34 }
 0x249   :  { %3658 = vmatpush3.bf16.msra.mxu1 %v4270_v34  ;;  %v4283_v34 = vld [vmem:[#allocation2 + $0x3a8] ss:$16 sps:$4 sm:$0xff]  }
 0x24a   :  { %3651 = vmatprep.subr.bf16.mxu1 %v4271_v35 }
 0x24c   :  { %1826 = vmatmul.mubr.bf16.gmra.mrb[72].mxu1 %v4194_v12 }
 0x24d   :  { %1833 = vmatprep.mubr.bf16.mxu1 %v4195_v13  ;;  %3659 = vmatpush3.bf16.msra.mxu1 %v4271_v35  ;;  %v4277_v13 = vld [vmem:[#allocation2 + $0x38c] ss:$16 sps:$4 sm:$0xff]  }
 0x24e   :  { %3652 = vmatprep.subr.bf16.mxu1 %v4275_v38 }
 0x251   :  { %3660 = vmatpush3.bf16.msra.mxu1 %v4275_v38 }
 0x252   :  { %3653 = vmatprep.subr.bf16.mxu1 %v4276_v39 }
 0x254   :  { %1834 = vmatmul.mubr.bf16.gmra.mrb[76].mxu1 %v4197_v14 }
 0x255   :  { %1841 = vmatprep.mubr.bf16.mxu1 %v4198_v15  ;;  %3661 = vmatpush3.bf16.msra.mxu1 %v4276_v39 }
 0x256   :  { %3654 = vmatprep.subr.bf16.mxu1 %v4280_v42 }
 0x259   :  { %3662 = vmatpush3.bf16.msra.mxu1 %v4280_v42 }
 0x25c   :  { %1842 = vmatmul.mubr.bf16.gmra.mrb[80].mxu1 %v4200_v16 }
 0x25d   :  { %1849 = vmatprep.mubr.bf16.mxu1 %v4201_v17 }
 0x264   :  { %1850 = vmatmul.mubr.bf16.gmra.mrb[84].mxu1 %v4203_v18 }
 0x265   :  { %1857 = vmatprep.mubr.bf16.mxu1 %v4204_v19 }
 0x26c   :  { %1858 = vmatmul.mubr.bf16.gmra.mrb[88].mxu1 %v4206_v20 }
 0x26d   :  { %1865 = vmatprep.mubr.bf16.mxu1 %v4207_v21 }
 0x274   :  { %1866 = vmatmul.mubr.bf16.gmra.mrb[92].mxu1 %v4209_v22  ;;  %v4279_v22 = vld [vmem:[#allocation2 + $0x388] ss:$16 sps:$4 sm:$0xff]  }
 0x275   :  { %1873 = vmatprep.mubr.bf16.mxu1 %v4210_v23 }
 0x27c   :  { %1874 = vmatmul.mubr.bf16.gmra.mrb[96].mxu1 %v4212_v24  ;;  %v4281_v24 = vld [vmem:[#allocation2 + $0x3ac] ss:$16 sps:$4 sm:$0xff]  }
 0x27d   :  { %1881 = vmatprep.mubr.bf16.mxu1 %v4213_v25 }
 0x284   :  { %1882 = vmatmul.mubr.bf16.gmra.mrb[100].mxu1 %v4215_v27 }
 0x285   :  { %1889 = vmatprep.mubr.bf16.mxu1 %v4216_v29 }
 0x28c   :  { %1890 = vmatmul.mubr.bf16.gmra.mrb[104].mxu1 %v4218_v32 }
 0x28d   :  { %1897 = vmatprep.mubr.bf16.mxu1 %v4219_v33 }
 0x294   :  { %1898 = vmatmul.mubr.bf16.gmra.mrb[108].mxu1 %v4221_v36  ;;  %v4284_v36 = vld [vmem:[#allocation2 + $0x3cc] ss:$16 sps:$4 sm:$0xff]  }
 0x295   :  { %1905 = vmatprep.mubr.bf16.mxu1 %v4222_v37 }
 0x29c   :  { %1906 = vmatmul.mubr.bf16.gmra.mrb[112].mxu1 %v4224_v40 }
 0x29d   :  { %1913 = vmatprep.mubr.bf16.mxu1 %v4225_v41 }
 0x2a4   :  { %1914 = vmatmul.mubr.bf16.gmra.mrb[116].mxu1 %v4227_v43 }
 0x2a5   :  { %1921 = vmatprep.mubr.bf16.mxu1 %v4228_v44 }
 0x2ac   :  { %1922 = vmatmul.mubr.bf16.gmra.mrb[120].mxu1 %v4230_v45  ;;  %v4286_v45 = vld [vmem:[#allocation2 + $0x3c8] ss:$16 sps:$4 sm:$0xff]  }
 0x2ad   :  { %1929 = vmatprep.mubr.bf16.mxu1 %v4231_v46 }
 0x2b4   :  { %1930 = vmatmul.mubr.bf16.gmra.mrb[124].mxu1 %v4233_v47  ;;  %v4287_v47 = vld [vmem:[#allocation2 + $0x3ec] ss:$16 sps:$4 sm:$0xff]  }
 0x2b5   :  { %1937 = vmatprep.mubr.bf16.mxu1 %v4234_v48 }
 0x2bc   :  { %1938 = vmatmul.mubr.bf16.gmra.mrb[128].mxu1 %v4236_v49 }
 0x2bd   :  { %1945 = vmatprep.mubr.bf16.mxu1 %v4237_v50 }
 0x2c4   :  { %1946 = vmatmul.mubr.bf16.gmra.mrb[132].mxu1 %v4239_v51 }
 0x2c5   :  { %1953 = vmatprep.mubr.bf16.mxu1 %v4240_v52 }
 0x2cc   :  { %1954 = vmatmul.mubr.bf16.gmra.mrb[136].mxu1 %v4242_v53 }
 0x2cd   :  { %1961 = vmatprep.mubr.bf16.mxu1 %v4243_v54 }
 0x2d4   :  { %1962 = vmatmul.mubr.bf16.gmra.mrb[140].mxu1 %v4245_v55 }
 0x2d5   :  { %1969 = vmatprep.mubr.bf16.mxu1 %v4246_v56  ;;  %v4289_v56 = vld [vmem:[#allocation2 + $0x3e8] ss:$16 sps:$4 sm:$0xff]  }
 0x2dc   :  { %1970 = vmatmul.mubr.bf16.gmra.mrb[144].mxu1 %v4248_v57 }
 0x2dd   :  { %1977 = vmatprep.mubr.bf16.mxu1 %v4249_v58 }
 0x2e4   :  { %1978 = vmatmul.mubr.bf16.gmra.mrb[148].mxu1 %v4251_v59 }
 0x2e5   :  { %1985 = vmatprep.mubr.bf16.mxu1 %v4252_v60 }
 0x2ec   :  { %1986 = vmatmul.mubr.bf16.gmra.mrb[152].mxu1 %v4254_v61 }
 0x2ed   :  { %1993 = vmatprep.mubr.bf16.mxu1 %v4255_v62 }
 0x2f4   :  { %1994 = vmatmul.mubr.bf16.gmra.mrb[156].mxu1 %v4257_v63 }
 0x2f5   :  { %2001 = vmatprep.mubr.bf16.mxu1 %v4258_v0 }
 0x2fc   :  { %2002 = vmatmul.mubr.bf16.gmra.mrb[160].mxu1 %v4260_v1 }
 0x2fd   :  { %2009 = vmatprep.mubr.bf16.mxu1 %v4262_v2 }
 0x304   :  { %2010 = vmatmul.mubr.bf16.gmra.mrb[164].mxu1 %v4264_v3 }
 0x305   :  { %2017 = vmatprep.mubr.bf16.mxu1 %v4267_v4 }
 0x30c   :  { %2018 = vmatmul.mubr.bf16.gmra.mrb[168].mxu1 %v4269_v5 }
 0x30d   :  { %2025 = vmatprep.mubr.bf16.mxu1 %v4272_v6 }
 0x30f   :  { %v1811_v8 = vpop.f32.mrb[64].mxu1 }
 0x310   :  { %v3663_v9 = vadd.f32 %v4720_v7, %v1811_v8  ;;  %v1813_v10 = vpop.f32.mrb[65].mxu1 }
 0x311   :  { %v1814_v12 = vpop.f32.mrb[66].mxu1 }
 0x312   :  { %v3664_v14 = vadd.f32 %v4720_v7, %v1814_v12  ;;  %v1816_v15 = vpop.f32.mrb[67].mxu1  ;;  %v2066_v16 = vmax.f32 %v3663_v9, 0.0 }
 0x314   :  { %v2067_v17 = vmax.f32 %v3664_v14, 0.0  ;;  %2026 = vmatmul.mubr.bf16.gmra.mrb[172].mxu1 %v4274_v11 }
 0x315   :  { %2033 = vmatprep.mubr.bf16.mxu1 %v4277_v13 }
 0x316   :  { %v2130_v18 = vpack.c.bf16 %v2067_v17, %v2066_v16 }
 0x317   :  { %v1819_v19 = vpop.f32.mrb[68].mxu1 }
 0x318   :  { %v3665_v20 = vadd.f32 %v4720_v7, %v1819_v19  ;;  %v1821_v21 = vpop.f32.mrb[69].mxu1  ;;  %3583 = vmatprep.mubr.bf16.mxu0 %v2130_v18 }
 0x319   :  { %v1822_v23 = vpop.f32.mrb[70].mxu1 }
 0x31a   :  { %v3666_v25 = vadd.f32 %v4720_v7, %v1822_v23  ;;  %v1824_v26 = vpop.f32.mrb[71].mxu1  ;;  %v2068_v27 = vmax.f32 %v3665_v20, 0.0 }
 0x31c   :  { %v2069_v29 = vmax.f32 %v3666_v25, 0.0  ;;  %2034 = vmatmul.mubr.bf16.gmra.mrb[176].mxu1 %v4279_v22 }
 0x31d   :  { %2041 = vmatprep.mubr.bf16.mxu1 %v4281_v24 }
 0x31e   :  { %v2131_v30 = vpack.c.bf16 %v2069_v29, %v2068_v27 }
 0x31f   :  { %v1827_v31 = vpop.f32.mrb[72].mxu1 }
 0x320   :  { %v3667_v32 = vadd.f32 %v4720_v7, %v1827_v31  ;;  %v1829_v33 = vpop.f32.mrb[73].mxu1  ;;  %3584 = vmatmul.mubr.bf16.vlgmr.msra.gmra.mrb[0].mxu0 %v2131_v30 }
 0x321   :  { %v1830_v35 = vpop.f32.mrb[74].mxu1 }
 0x322   :  { %v3668_v37 = vadd.f32 %v4720_v7, %v1830_v35  ;;  %v1832_v38 = vpop.f32.mrb[75].mxu1  ;;  %v2070_v39 = vmax.f32 %v3667_v32, 0.0 }
 0x324   :  { %v2071_v40 = vmax.f32 %v3668_v37, 0.0  ;;  %2042 = vmatmul.mubr.bf16.gmra.mrb[180].mxu1 %v4283_v34 }
 0x325   :  { %2049 = vmatprep.mubr.bf16.mxu1 %v4284_v36 }
 0x326   :  { %v2132_v41 = vpack.c.bf16 %v2071_v40, %v2070_v39 }
 0x327   :  { %v1835_v42 = vpop.f32.mrb[76].mxu1 }
 0x328   :  { %v3669_v43 = vadd.f32 %v4720_v7, %v1835_v42  ;;  %v1837_v44 = vpop.f32.mrb[77].mxu1  ;;  %3587 = vmatprep.mubr.bf16.mxu0 %v2132_v41 }
 0x329   :  { %v1838_v46 = vpop.f32.mrb[78].mxu1 }
 0x32a   :  { %v3670_v48 = vadd.f32 %v4720_v7, %v1838_v46  ;;  %v1840_v49 = vpop.f32.mrb[79].mxu1  ;;  %v2072_v50 = vmax.f32 %v3669_v43, 0.0 }
 0x32c   :  { %v2073_v51 = vmax.f32 %v3670_v48, 0.0  ;;  %2050 = vmatmul.mubr.bf16.gmra.mrb[184].mxu1 %v4286_v45 }
 0x32d   :  { %2057 = vmatprep.mubr.bf16.mxu1 %v4287_v47 }
 0x32e   :  { %v2133_v52 = vpack.c.bf16 %v2073_v51, %v2072_v50 }
 0x32f   :  { %v1843_v53 = vpop.f32.mrb[80].mxu1 }
 0x330   :  { %v3671_v54 = vadd.f32 %v4720_v7, %v1843_v53  ;;  %v1845_v55 = vpop.f32.mrb[81].mxu1  ;;  %3588 = vmatmul.mubr.bf16.gmra.mrb[4].mxu0 %v2133_v52 }
 0x331   :  { %v1846_v57 = vpop.f32.mrb[82].mxu1 }
 0x332   :  { %v3672_v58 = vadd.f32 %v4720_v7, %v1846_v57  ;;  %v1848_v59 = vpop.f32.mrb[83].mxu1  ;;  %v2074_v60 = vmax.f32 %v3671_v54, 0.0 }
 0x334   :  { %v2075_v61 = vmax.f32 %v3672_v58, 0.0  ;;  %2058 = vmatmul.mubr.bf16.gmra.mrb[188].mxu1 %v4289_v56 }
 0x336   :  { %v2134_v62 = vpack.c.bf16 %v2075_v61, %v2074_v60 }
 0x337   :  { %v1851_v63 = vpop.f32.mrb[84].mxu1 }
 0x338   :  { %v3673_v0 = vadd.f32 %v4720_v7, %v1851_v63  ;;  %v1853_v1 = vpop.f32.mrb[85].mxu1  ;;  %3591 = vmatprep.mubr.bf16.mxu0 %v2134_v62 }
 0x339   :  { %v1854_v2 = vpop.f32.mrb[86].mxu1 }
 0x33a   :  { %v3674_v3 = vadd.f32 %v4720_v7, %v1854_v2  ;;  %v1856_v4 = vpop.f32.mrb[87].mxu1  ;;  %v2076_v5 = vmax.f32 %v3673_v0, 0.0 }
 0x33c   :  { %v2077_v6 = vmax.f32 %v3674_v3, 0.0 }
 0x33e   :  { %v2135_v8 = vpack.c.bf16 %v2077_v6, %v2076_v5 }
 0x33f   :  { %v1859_v9 = vpop.f32.mrb[88].mxu1 }
 0x340   :  { %v3675_v10 = vadd.f32 %v4720_v7, %v1859_v9  ;;  %v1861_v11 = vpop.f32.mrb[89].mxu1  ;;  %3592 = vmatmul.mubr.bf16.gmra.mrb[8].mxu0 %v2135_v8 }
 0x341   :  { %v1862_v12 = vpop.f32.mrb[90].mxu1 }
 0x342   :  { %v3676_v13 = vadd.f32 %v4720_v7, %v1862_v12  ;;  %v1864_v14 = vpop.f32.mrb[91].mxu1  ;;  %v2078_v15 = vmax.f32 %v3675_v10, 0.0 }
 0x344   :  { %v2079_v16 = vmax.f32 %v3676_v13, 0.0 }
 0x346   :  { %v2136_v17 = vpack.c.bf16 %v2079_v16, %v2078_v15 }
 0x347   :  { %v1867_v18 = vpop.f32.mrb[92].mxu1 }
 0x348   :  { %v3677_v19 = vadd.f32 %v4720_v7, %v1867_v18  ;;  %v1869_v20 = vpop.f32.mrb[93].mxu1  ;;  %3595 = vmatprep.mubr.bf16.mxu0 %v2136_v17 }
 0x349   :  { %v1870_v21 = vpop.f32.mrb[94].mxu1 }
 0x34a   :  { %v3678_v22 = vadd.f32 %v4720_v7, %v1870_v21  ;;  %v1872_v23 = vpop.f32.mrb[95].mxu1  ;;  %v2080_v24 = vmax.f32 %v3677_v19, 0.0 }
 0x34c   :  { %v2081_v25 = vmax.f32 %v3678_v22, 0.0 }
 0x34e   :  { %v2137_v26 = vpack.c.bf16 %v2081_v25, %v2080_v24 }
 0x34f   :  { %v1875_v27 = vpop.f32.mrb[96].mxu1 }
 0x350   :  { %v3679_v29 = vadd.f32 %v4720_v7, %v1875_v27  ;;  %v1877_v30 = vpop.f32.mrb[97].mxu1  ;;  %3596 = vmatmul.mubr.bf16.gmra.mrb[12].mxu0 %v2137_v26 }
 0x351   :  { %v1878_v31 = vpop.f32.mrb[98].mxu1 }
 0x352   :  { %v3680_v32 = vadd.f32 %v4720_v7, %v1878_v31  ;;  %v1880_v33 = vpop.f32.mrb[99].mxu1  ;;  %v2082_v34 = vmax.f32 %v3679_v29, 0.0 }
 0x354   :  { %v2083_v35 = vmax.f32 %v3680_v32, 0.0 }
 0x356   :  { %v2138_v36 = vpack.c.bf16 %v2083_v35, %v2082_v34 }
 0x357   :  { %v1883_v37 = vpop.f32.mrb[100].mxu1 }
 0x358   :  { %v3681_v38 = vadd.f32 %v4720_v7, %v1883_v37  ;;  %v1885_v39 = vpop.f32.mrb[101].mxu1  ;;  %3599 = vmatprep.mubr.bf16.mxu0 %v2138_v36 }
 0x359   :  { %v1886_v40 = vpop.f32.mrb[102].mxu1 }
 0x35a   :  { %v3682_v41 = vadd.f32 %v4720_v7, %v1886_v40  ;;  %v1888_v42 = vpop.f32.mrb[103].mxu1  ;;  %v2084_v43 = vmax.f32 %v3681_v38, 0.0 }
 0x35c   :  { %v2085_v44 = vmax.f32 %v3682_v41, 0.0 }
 0x35e   :  { %v2139_v45 = vpack.c.bf16 %v2085_v44, %v2084_v43 }
 0x35f   :  { %v1891_v46 = vpop.f32.mrb[104].mxu1 }
 0x360   :  { %v3683_v47 = vadd.f32 %v4720_v7, %v1891_v46  ;;  %v1893_v48 = vpop.f32.mrb[105].mxu1  ;;  %3600 = vmatmul.mubr.bf16.gmra.mrb[16].mxu0 %v2139_v45 }
 0x361   :  { %v1894_v49 = vpop.f32.mrb[106].mxu1 }
 0x362   :  { %v3684_v50 = vadd.f32 %v4720_v7, %v1894_v49  ;;  %v1896_v51 = vpop.f32.mrb[107].mxu1  ;;  %v2086_v52 = vmax.f32 %v3683_v47, 0.0 }
 0x364   :  { %v2087_v53 = vmax.f32 %v3684_v50, 0.0 }
 0x366   :  { %v2140_v54 = vpack.c.bf16 %v2087_v53, %v2086_v52 }
 0x367   :  { %v1899_v55 = vpop.f32.mrb[108].mxu1 }
 0x368   :  { %v3685_v56 = vadd.f32 %v4720_v7, %v1899_v55  ;;  %v1901_v57 = vpop.f32.mrb[109].mxu1  ;;  %3603 = vmatprep.mubr.bf16.mxu0 %v2140_v54 }
 0x369   :  { %v1902_v58 = vpop.f32.mrb[110].mxu1 }
 0x36a   :  { %v3686_v59 = vadd.f32 %v4720_v7, %v1902_v58  ;;  %v1904_v60 = vpop.f32.mrb[111].mxu1  ;;  %v2088_v61 = vmax.f32 %v3685_v56, 0.0 }
 0x36c   :  { %v2089_v62 = vmax.f32 %v3686_v59, 0.0 }
 0x36e   :  { %v2141_v63 = vpack.c.bf16 %v2089_v62, %v2088_v61 }
 0x36f   :  { %v1907_v0 = vpop.f32.mrb[112].mxu1 }
 0x370   :  { %v3687_v1 = vadd.f32 %v4720_v7, %v1907_v0  ;;  %v1909_v2 = vpop.f32.mrb[113].mxu1  ;;  %3604 = vmatmul.mubr.bf16.gmra.mrb[20].mxu0 %v2141_v63 }
 0x371   :  { %v1910_v3 = vpop.f32.mrb[114].mxu1 }
 0x372   :  { %v3688_v4 = vadd.f32 %v4720_v7, %v1910_v3  ;;  %v1912_v5 = vpop.f32.mrb[115].mxu1  ;;  %v2090_v6 = vmax.f32 %v3687_v1, 0.0 }
 0x374   :  { %v2091_v8 = vmax.f32 %v3688_v4, 0.0 }
 0x376   :  { %v2142_v9 = vpack.c.bf16 %v2091_v8, %v2090_v6 }
 0x377   :  { %v1915_v10 = vpop.f32.mrb[116].mxu1 }
 0x378   :  { %v3689_v11 = vadd.f32 %v4720_v7, %v1915_v10  ;;  %v1917_v12 = vpop.f32.mrb[117].mxu1  ;;  %3607 = vmatprep.mubr.bf16.mxu0 %v2142_v9 }
 0x379   :  { %v1918_v13 = vpop.f32.mrb[118].mxu1 }
 0x37a   :  { %v3690_v14 = vadd.f32 %v4720_v7, %v1918_v13  ;;  %v1920_v15 = vpop.f32.mrb[119].mxu1  ;;  %v2092_v16 = vmax.f32 %v3689_v11, 0.0 }
 0x37c   :  { %v2093_v17 = vmax.f32 %v3690_v14, 0.0 }
 0x37e   :  { %v2143_v18 = vpack.c.bf16 %v2093_v17, %v2092_v16 }
 0x37f   :  { %v1923_v19 = vpop.f32.mrb[120].mxu1 }
 0x380   :  { %v3691_v20 = vadd.f32 %v4720_v7, %v1923_v19  ;;  %v1925_v21 = vpop.f32.mrb[121].mxu1  ;;  %3608 = vmatmul.mubr.bf16.gmra.mrb[24].mxu0 %v2143_v18 }
 0x381   :  { %v1926_v22 = vpop.f32.mrb[122].mxu1 }
 0x382   :  { %v3692_v23 = vadd.f32 %v4720_v7, %v1926_v22  ;;  %v1928_v24 = vpop.f32.mrb[123].mxu1  ;;  %v2094_v25 = vmax.f32 %v3691_v20, 0.0 }
 0x384   :  { %v2095_v26 = vmax.f32 %v3692_v23, 0.0 }
 0x386   :  { %v2144_v27 = vpack.c.bf16 %v2095_v26, %v2094_v25 }
 0x387   :  { %v1931_v29 = vpop.f32.mrb[124].mxu1 }
 0x388   :  { %v3693_v30 = vadd.f32 %v4720_v7, %v1931_v29  ;;  %v1933_v31 = vpop.f32.mrb[125].mxu1  ;;  %3611 = vmatprep.mubr.bf16.mxu0 %v2144_v27 }
 0x389   :  { %v1934_v32 = vpop.f32.mrb[126].mxu1 }
 0x38a   :  { %v3694_v33 = vadd.f32 %v4720_v7, %v1934_v32  ;;  %v1936_v34 = vpop.f32.mrb[127].mxu1  ;;  %v2096_v35 = vmax.f32 %v3693_v30, 0.0 }
 0x38c   :  { %v2097_v36 = vmax.f32 %v3694_v33, 0.0 }
 0x38e   :  { %v2145_v37 = vpack.c.bf16 %v2097_v36, %v2096_v35 }
 0x38f   :  { %v1939_v38 = vpop.f32.mrb[128].mxu1 }
 0x390   :  { %v3695_v39 = vadd.f32 %v4720_v7, %v1939_v38  ;;  %v1941_v40 = vpop.f32.mrb[129].mxu1  ;;  %3612 = vmatmul.mubr.bf16.gmra.mrb[28].mxu0 %v2145_v37 }
 0x391   :  { %v1942_v41 = vpop.f32.mrb[130].mxu1 }
 0x392   :  { %v3696_v42 = vadd.f32 %v4720_v7, %v1942_v41  ;;  %v1944_v43 = vpop.f32.mrb[131].mxu1  ;;  %v2098_v44 = vmax.f32 %v3695_v39, 0.0 }
 0x394   :  { %v2099_v45 = vmax.f32 %v3696_v42, 0.0 }
 0x396   :  { %v2146_v46 = vpack.c.bf16 %v2099_v45, %v2098_v44 }
 0x397   :  { %v1947_v47 = vpop.f32.mrb[132].mxu1 }
 0x398   :  { %v3697_v48 = vadd.f32 %v4720_v7, %v1947_v47  ;;  %v1949_v49 = vpop.f32.mrb[133].mxu1  ;;  %3615 = vmatprep.mubr.bf16.mxu0 %v2146_v46 }
 0x399   :  { %v1950_v50 = vpop.f32.mrb[134].mxu1 }
 0x39a   :  { %v3698_v51 = vadd.f32 %v4720_v7, %v1950_v50  ;;  %v1952_v52 = vpop.f32.mrb[135].mxu1  ;;  %v2100_v53 = vmax.f32 %v3697_v48, 0.0 }
 0x39c   :  { %v2101_v54 = vmax.f32 %v3698_v51, 0.0 }
 0x39e   :  { %v2147_v55 = vpack.c.bf16 %v2101_v54, %v2100_v53 }
 0x39f   :  { %v1955_v56 = vpop.f32.mrb[136].mxu1 }
 0x3a0   :  { %v3699_v57 = vadd.f32 %v4720_v7, %v1955_v56  ;;  %v1957_v58 = vpop.f32.mrb[137].mxu1  ;;  %3616 = vmatmul.mubr.bf16.gmra.mrb[32].mxu0 %v2147_v55 }
 0x3a1   :  { %v1958_v59 = vpop.f32.mrb[138].mxu1 }
 0x3a2   :  { %v3700_v60 = vadd.f32 %v4720_v7, %v1958_v59  ;;  %v1960_v61 = vpop.f32.mrb[139].mxu1  ;;  %v2102_v62 = vmax.f32 %v3699_v57, 0.0 }
 0x3a4   :  { %v2103_v63 = vmax.f32 %v3700_v60, 0.0 }
 0x3a6   :  { %v2148_v0 = vpack.c.bf16 %v2103_v63, %v2102_v62 }
 0x3a7   :  { %v1963_v1 = vpop.f32.mrb[140].mxu1 }
 0x3a8   :  { %v3701_v2 = vadd.f32 %v4720_v7, %v1963_v1  ;;  %v1965_v3 = vpop.f32.mrb[141].mxu1  ;;  %3619 = vmatprep.mubr.bf16.mxu0 %v2148_v0 }
 0x3a9   :  { %v1966_v4 = vpop.f32.mrb[142].mxu1 }
 0x3aa   :  { %v3702_v5 = vadd.f32 %v4720_v7, %v1966_v4  ;;  %v1968_v6 = vpop.f32.mrb[143].mxu1  ;;  %v2104_v8 = vmax.f32 %v3701_v2, 0.0 }
 0x3ac   :  { %v2105_v9 = vmax.f32 %v3702_v5, 0.0 }
 0x3ae   :  { %v2149_v10 = vpack.c.bf16 %v2105_v9, %v2104_v8 }
 0x3af   :  { %v1971_v11 = vpop.f32.mrb[144].mxu1 }
 0x3b0   :  { %v3703_v12 = vadd.f32 %v4720_v7, %v1971_v11  ;;  %v1973_v13 = vpop.f32.mrb[145].mxu1  ;;  %3620 = vmatmul.mubr.bf16.gmra.mrb[36].mxu0 %v2149_v10 }
 0x3b1   :  { %v1974_v14 = vpop.f32.mrb[146].mxu1 }
 0x3b2   :  { %v3704_v15 = vadd.f32 %v4720_v7, %v1974_v14  ;;  %v1976_v16 = vpop.f32.mrb[147].mxu1  ;;  %v2106_v17 = vmax.f32 %v3703_v12, 0.0 }
 0x3b4   :  { %v2107_v18 = vmax.f32 %v3704_v15, 0.0 }
 0x3b6   :  { %v2150_v19 = vpack.c.bf16 %v2107_v18, %v2106_v17 }
 0x3b7   :  { %v1979_v20 = vpop.f32.mrb[148].mxu1 }
 0x3b8   :  { %v3705_v21 = vadd.f32 %v4720_v7, %v1979_v20  ;;  %v1981_v22 = vpop.f32.mrb[149].mxu1  ;;  %3623 = vmatprep.mubr.bf16.mxu0 %v2150_v19 }
 0x3b9   :  { %v1982_v23 = vpop.f32.mrb[150].mxu1 }
 0x3ba   :  { %v3706_v24 = vadd.f32 %v4720_v7, %v1982_v23  ;;  %v1984_v25 = vpop.f32.mrb[151].mxu1  ;;  %v2108_v26 = vmax.f32 %v3705_v21, 0.0 }
 0x3bc   :  { %v2109_v27 = vmax.f32 %v3706_v24, 0.0 }
 0x3be   :  { %v2151_v29 = vpack.c.bf16 %v2109_v27, %v2108_v26 }
 0x3bf   :  { %v1987_v30 = vpop.f32.mrb[152].mxu1 }
 0x3c0   :  { %v3707_v31 = vadd.f32 %v4720_v7, %v1987_v30  ;;  %v1989_v32 = vpop.f32.mrb[153].mxu1  ;;  %3624 = vmatmul.mubr.bf16.gmra.mrb[40].mxu0 %v2151_v29 }
 0x3c1   :  { %v1990_v33 = vpop.f32.mrb[154].mxu1 }
 0x3c2   :  { %v3708_v34 = vadd.f32 %v4720_v7, %v1990_v33  ;;  %v1992_v35 = vpop.f32.mrb[155].mxu1  ;;  %v2110_v36 = vmax.f32 %v3707_v31, 0.0 }
 0x3c4   :  { %v2111_v37 = vmax.f32 %v3708_v34, 0.0 }
 0x3c6   :  { %v2152_v38 = vpack.c.bf16 %v2111_v37, %v2110_v36 }
 0x3c7   :  { %v1995_v39 = vpop.f32.mrb[156].mxu1 }
 0x3c8   :  { %v3709_v40 = vadd.f32 %v4720_v7, %v1995_v39  ;;  %v1997_v41 = vpop.f32.mrb[157].mxu1  ;;  %3627 = vmatprep.mubr.bf16.mxu0 %v2152_v38 }
 0x3c9   :  { %v1998_v42 = vpop.f32.mrb[158].mxu1 }
 0x3ca   :  { %v3710_v43 = vadd.f32 %v4720_v7, %v1998_v42  ;;  %v2000_v44 = vpop.f32.mrb[159].mxu1  ;;  %v2112_v45 = vmax.f32 %v3709_v40, 0.0 }
 0x3cc   :  { %v2113_v46 = vmax.f32 %v3710_v43, 0.0 }
 0x3ce   :  { %v2153_v47 = vpack.c.bf16 %v2113_v46, %v2112_v45 }
 0x3cf   :  { %v2003_v48 = vpop.f32.mrb[160].mxu1 }
 0x3d0   :  { %v3711_v49 = vadd.f32 %v4720_v7, %v2003_v48  ;;  %v2005_v50 = vpop.f32.mrb[161].mxu1  ;;  %3628 = vmatmul.mubr.bf16.gmra.mrb[44].mxu0 %v2153_v47 }
 0x3d1   :  { %v2006_v51 = vpop.f32.mrb[162].mxu1  ;;  %v4290_v50 = vld [vmem:[#allocation2 + $0x4] ss:$16 sps:$4 sm:$0xff]  }
 0x3d2   :  { %v3712_v52 = vadd.f32 %v4720_v7, %v2006_v51  ;;  %v2008_v53 = vpop.f32.mrb[163].mxu1  ;;  %v2114_v54 = vmax.f32 %v3711_v49, 0.0 }
 0x3d4   :  { %v2115_v55 = vmax.f32 %v3712_v52, 0.0 }
 0x3d6   :  { %v2154_v56 = vpack.c.bf16 %v2115_v55, %v2114_v54 }
 0x3d7   :  { %v2011_v57 = vpop.f32.mrb[164].mxu1 }
 0x3d8   :  { %v3713_v58 = vadd.f32 %v4720_v7, %v2011_v57  ;;  %v2013_v59 = vpop.f32.mrb[165].mxu1  ;;  %3631 = vmatprep.mubr.bf16.mxu0 %v2154_v56 }
 0x3d9   :  { %v2014_v60 = vpop.f32.mrb[166].mxu1 }
 0x3da   :  { %v3714_v61 = vadd.f32 %v4720_v7, %v2014_v60  ;;  %v2016_v62 = vpop.f32.mrb[167].mxu1  ;;  %v2116_v63 = vmax.f32 %v3713_v58, 0.0 }
 0x3dc   :  { %v2117_v0 = vmax.f32 %v3714_v61, 0.0 }
 0x3de   :  { %v2155_v1 = vpack.c.bf16 %v2117_v0, %v2116_v63 }
 0x3df   :  { %v2019_v2 = vpop.f32.mrb[168].mxu1 }
 0x3e0   :  { %v3715_v3 = vadd.f32 %v4720_v7, %v2019_v2  ;;  %v2021_v4 = vpop.f32.mrb[169].mxu1  ;;  %3632 = vmatmul.mubr.bf16.gmra.mrb[48].mxu0 %v2155_v1 }
 0x3e1   :  { %v2022_v5 = vpop.f32.mrb[170].mxu1 }
 0x3e2   :  { %v3716_v6 = vadd.f32 %v4720_v7, %v2022_v5  ;;  %v2024_v8 = vpop.f32.mrb[171].mxu1  ;;  %v2118_v9 = vmax.f32 %v3715_v3, 0.0 }
 0x3e4   :  { %v2119_v10 = vmax.f32 %v3716_v6, 0.0 }
 0x3e6   :  { %v2156_v11 = vpack.c.bf16 %v2119_v10, %v2118_v9 }
 0x3e7   :  { %v2027_v12 = vpop.f32.mrb[172].mxu1 }
 0x3e8   :  { %v3717_v13 = vadd.f32 %v4720_v7, %v2027_v12  ;;  %v2029_v14 = vpop.f32.mrb[173].mxu1  ;;  %3635 = vmatprep.mubr.bf16.mxu0 %v2156_v11 }
 0x3e9   :  { %v2030_v15 = vpop.f32.mrb[174].mxu1 }
 0x3ea   :  { %v3718_v16 = vadd.f32 %v4720_v7, %v2030_v15  ;;  %v2032_v17 = vpop.f32.mrb[175].mxu1  ;;  %v2120_v18 = vmax.f32 %v3717_v13, 0.0 }
 0x3ec   :  { %v2121_v19 = vmax.f32 %v3718_v16, 0.0 }
 0x3ee   :  { %v2157_v20 = vpack.c.bf16 %v2121_v19, %v2120_v18 }
 0x3ef   :  { %v2035_v21 = vpop.f32.mrb[176].mxu1 }
 0x3f0   :  { %v3719_v22 = vadd.f32 %v4720_v7, %v2035_v21  ;;  %v2037_v23 = vpop.f32.mrb[177].mxu1  ;;  %3636 = vmatmul.mubr.bf16.gmra.mrb[52].mxu0 %v2157_v20 }
 0x3f1   :  { %v2038_v24 = vpop.f32.mrb[178].mxu1 }
 0x3f2   :  { %v3720_v25 = vadd.f32 %v4720_v7, %v2038_v24  ;;  %v2040_v26 = vpop.f32.mrb[179].mxu1  ;;  %v2122_v29 = vmax.f32 %v3719_v22, 0.0 }
 0x3f3   :  { %v3585_v27 = vpop.f32.mrb[0].mxu0 }
 0x3f4   :  { %v2123_v30 = vmax.f32 %v3720_v25, 0.0  ;;  %v2260_v31 = vpop.f32.mrb[1].mxu0 }
 0x3f5   :  { %v3586_v32 = vpop.f32.mrb[2].mxu0 }
 0x3f6   :  { %v2158_v33 = vpack.c.bf16 %v2123_v30, %v2122_v29  ;;  %v2516_v34 = vpack.c.bf16 %v3586_v32, %v3585_v27  ;;  %v2263_v35 = vpop.f32.mrb[3].mxu0 }
 0x3f7   :  { %v2515_v36 = vpack.c.bf16 %v2263_v35, %v2260_v31  ;;  %v2043_v37 = vpop.f32.mrb[180].mxu1 }
 0x3f8   :  { %v3721_v38 = vadd.f32 %v4720_v7, %v2043_v37  ;;  %v2045_v39 = vpop.f32.mrb[181].mxu1  ;;  %3639 = vmatprep.mubr.bf16.mxu0 %v2158_v33 }
 0x3f9   :  { %v2046_v40 = vpop.f32.mrb[182].mxu1  ;;  %2555 = vmatpush1.bf16.msra.mxu0 %v2515_v36 }
 0x3fa   :  { %v3722_v41 = vadd.f32 %v4720_v7, %v2046_v40  ;;  %v2048_v42 = vpop.f32.mrb[183].mxu1  ;;  %2556 = vmatprep.subr.bf16.mxu0 %v4469_v28  ;;  %v2124_v43 = vmax.f32 %v3721_v38, 0.0 }
 0x3fc   :  { %v2125_v44 = vmax.f32 %v3722_v41, 0.0 }
 0x3fd   :  { %2557 = vmatpush1.bf16.msra.mxu0 %v2516_v34 }
 0x3fe   :  { %v2159_v45 = vpack.c.bf16 %v2125_v44, %v2124_v43  ;;  %2558 = vmatprep.subr.bf16.mxu0 %v4469_v28  ;;  %v4291_v44 = vld [vmem:[#allocation2] ss:$16 sps:$4 sm:$0xff]  }
 0x3ff   :  { %v2051_v46 = vpop.f32.mrb[184].mxu1 }
 0x400   :  { %v3723_v47 = vadd.f32 %v4720_v7, %v2051_v46  ;;  %v2053_v48 = vpop.f32.mrb[185].mxu1  ;;  %3640 = vmatmul.mubr.bf16.gmra.mrb[56].mxu0 %v2159_v45  ;;  %v4292_v45 = vld [vmem:[#allocation2 + $0x24] ss:$16 sps:$4 sm:$0xff]  }
 0x401   :  { %v2054_v49 = vpop.f32.mrb[186].mxu1  ;;  %2586 = vmatprep.mubr.bf16.mxu0 %v4290_v50 }
 0x402   :  { %v3724_v51 = vadd.f32 %v4720_v7, %v2054_v49  ;;  %v2056_v52 = vpop.f32.mrb[187].mxu1  ;;  %v2126_v54 = vmax.f32 %v3723_v47, 0.0 }
 0x403   :  { %v3589_v53 = vpop.f32.mrb[4].mxu0  ;;  %v4293_v52 = vld [vmem:[#allocation2 + $0x20] ss:$16 sps:$4 sm:$0xff]  }
 0x404   :  { %v2127_v55 = vmax.f32 %v3724_v51, 0.0  ;;  %v2276_v56 = vpop.f32.mrb[5].mxu0 }
 0x405   :  { %v3590_v57 = vpop.f32.mrb[6].mxu0 }
 0x406   :  { %v2160_v58 = vpack.c.bf16 %v2127_v55, %v2126_v54  ;;  %v2518_v59 = vpack.c.bf16 %v3590_v57, %v3589_v53  ;;  %v2279_v60 = vpop.f32.mrb[7].mxu0  ;;  %v4294_v53 = vld [vmem:[#allocation2 + $0x44] ss:$16 sps:$4 sm:$0xff]   ;;  %v4295_v54 = vld [vmem:[#allocation2 + $0x40] ss:$16 sps:$4 sm:$0xff]  }
 0x407   :  { %v2517_v61 = vpack.c.bf16 %v2279_v60, %v2276_v56  ;;  %v2059_v62 = vpop.f32.mrb[188].mxu1  ;;  %v4296_v55 = vld [vmem:[#allocation2 + $0x64] ss:$16 sps:$4 sm:$0xff]  }
 0x408   :  { %v3725_v63 = vadd.f32 %v4720_v7, %v2059_v62  ;;  %v2061_v0 = vpop.f32.mrb[189].mxu1  ;;  %3643 = vmatprep.mubr.bf16.mxu1 %v2160_v58  ;;  %v4297_v62 = vld [vmem:[#allocation2 + $0x60] ss:$16 sps:$4 sm:$0xff]  }
 0x409   :  { %v2062_v1 = vpop.f32.mrb[190].mxu1  ;;  %2559 = vmatpush1.bf16.msra.mxu0 %v2517_v61  ;;  %v4299_v0 = vld [vmem:[#allocation2 + $0x80] ss:$16 sps:$4 sm:$0xff]  }
 0x40a   :  { %v3726_v2 = vadd.f32 %v4720_v7, %v2062_v1  ;;  %v2064_v3 = vpop.f32.mrb[191].mxu1  ;;  %2560 = vmatprep.subr.bf16.mxu0 %v4469_v28  ;;  %v2128_v4 = vmax.f32 %v3725_v63, 0.0  ;;  %v4298_v63 = vld [vmem:[#allocation2 + $0x84] ss:$16 sps:$4 sm:$0xff]  }
 0x40b   :  { %v4300_v1 = vld [vmem:[#allocation2 + $0xa4] ss:$16 sps:$4 sm:$0xff]  }
 0x40c   :  { %v2129_v5 = vmax.f32 %v3726_v2, 0.0 }
 0x40d   :  { %2561 = vmatpush1.bf16.msra.mxu0 %v2518_v59 }
 0x40e   :  { %v2161_v6 = vpack.c.bf16 %v2129_v5, %v2128_v4  ;;  %2562 = vmatprep.subr.bf16.mxu0 %v4469_v28 }
 0x410   :  { %3644 = vmatmul.mubr.bf16.vlgmr.msra.gmra.mrb[192].mxu1 %v2161_v6 }
 0x413   :  { %v3593_v8 = vpop.f32.mrb[8].mxu0 }
 0x414   :  { %v2292_v9 = vpop.f32.mrb[9].mxu0 }
 0x415   :  { %v3594_v10 = vpop.f32.mrb[10].mxu0 }
 0x416   :  { %v2520_v11 = vpack.c.bf16 %v3594_v10, %v3593_v8  ;;  %v2295_v12 = vpop.f32.mrb[11].mxu0  ;;  %v4302_v10 = vld [vmem:[#allocation2 + $0xc4] ss:$16 sps:$4 sm:$0xff]  }
 0x417   :  { %v2519_v13 = vpack.c.bf16 %v2295_v12, %v2292_v9  ;;  %v4301_v9 = vld [vmem:[#allocation2 + $0xa0] ss:$16 sps:$4 sm:$0xff]   ;;  %v4304_v12 = vld [vmem:[#allocation2 + $0xe4] ss:$16 sps:$4 sm:$0xff]  }
 0x419   :  { %2563 = vmatpush1.bf16.msra.mxu0 %v2519_v13 }
 0x41a   :  { %2564 = vmatprep.subr.bf16.mxu0 %v4469_v28 }
 0x41d   :  { %2565 = vmatpush1.bf16.msra.mxu0 %v2520_v11  ;;  %v4303_v11 = vld [vmem:[#allocation2 + $0xc0] ss:$16 sps:$4 sm:$0xff]  }
 0x41e   :  { %2566 = vmatprep.subr.bf16.mxu0 %v4469_v28 }
 0x423   :  { %v3597_v7 = vpop.f32.mrb[12].mxu0 }
 0x424   :  { %v2308_v14 = vpop.f32.mrb[13].mxu0 }
 0x425   :  { %v3598_v15 = vpop.f32.mrb[14].mxu0 }
 0x426   :  { %v2522_v16 = vpack.c.bf16 %v3598_v15, %v3597_v7  ;;  %v2311_v17 = vpop.f32.mrb[15].mxu0 }
 0x427   :  { %v2521_v18 = vpack.c.bf16 %v2311_v17, %v2308_v14 }
 0x429   :  { %2567 = vmatpush1.bf16.msra.mxu0 %v2521_v18  ;;  %v4305_v18 = vld [vmem:[#allocation2 + $0xe0] ss:$16 sps:$4 sm:$0xff]  }
 0x42a   :  { %2568 = vmatprep.subr.bf16.mxu0 %v4469_v28 }
 0x42d   :  { %2569 = vmatpush1.bf16.msra.mxu0 %v2522_v16 }
 0x42e   :  { %2570 = vmatprep.subr.bf16.mxu0 %v4469_v28 }
 0x433   :  { %v3601_v19 = vpop.f32.mrb[16].mxu0 }
 0x434   :  { %v2324_v20 = vpop.f32.mrb[17].mxu0 }
 0x435   :  { %v3602_v21 = vpop.f32.mrb[18].mxu0 }
 0x436   :  { %v2524_v22 = vpack.c.bf16 %v3602_v21, %v3601_v19  ;;  %v2327_v23 = vpop.f32.mrb[19].mxu0  ;;  %v4306_v19 = vld [vmem:[#allocation2 + $0x104] ss:$16 sps:$4 sm:$0xff]  }
 0x437   :  { %v2523_v24 = vpack.c.bf16 %v2327_v23, %v2324_v20  ;;  %v4307_v20 = vld [vmem:[#allocation2 + $0x100] ss:$16 sps:$4 sm:$0xff]   ;;  %v4308_v21 = vld [vmem:[#allocation2 + $0x124] ss:$16 sps:$4 sm:$0xff]  }
 0x439   :  { %2571 = vmatpush1.bf16.msra.mxu0 %v2523_v24 }
 0x43a   :  { %2572 = vmatprep.subr.bf16.mxu0 %v4469_v28 }
 0x43d   :  { %2573 = vmatpush1.bf16.msra.mxu0 %v2524_v22 }
 0x43e   :  { %2574 = vmatprep.subr.bf16.mxu0 %v4469_v28 }
 0x443   :  { %v3605_v25 = vpop.f32.mrb[20].mxu0 }
 0x444   :  { %v2340_v26 = vpop.f32.mrb[21].mxu0 }
 0x445   :  { %v3606_v27 = vpop.f32.mrb[22].mxu0 }
 0x446   :  { %v2526_v29 = vpack.c.bf16 %v3606_v27, %v3605_v25  ;;  %v2343_v30 = vpop.f32.mrb[23].mxu0 }
 0x447   :  { %v2525_v31 = vpack.c.bf16 %v2343_v30, %v2340_v26  ;;  %v4310_v30 = vld [vmem:[#allocation2 + $0x144] ss:$16 sps:$4 sm:$0xff]  }
 0x449   :  { %2575 = vmatpush1.bf16.msra.mxu0 %v2525_v31  ;;  %v4311_v31 = vld [vmem:[#allocation2 + $0x140] ss:$16 sps:$4 sm:$0xff]  }
 0x44a   :  { %2576 = vmatprep.subr.bf16.mxu0 %v4469_v28 }
 0x44d   :  { %2577 = vmatpush1.bf16.msra.mxu0 %v2526_v29  ;;  %v4309_v29 = vld [vmem:[#allocation2 + $0x120] ss:$16 sps:$4 sm:$0xff]  }
 0x44e   :  { %2578 = vmatprep.subr.bf16.mxu0 %v4469_v28 }
 0x453   :  { %v3609_v32 = vpop.f32.mrb[24].mxu0 }
 0x454   :  { %v2356_v33 = vpop.f32.mrb[25].mxu0 }
 0x455   :  { %v3610_v34 = vpop.f32.mrb[26].mxu0 }
 0x456   :  { %v2528_v35 = vpack.c.bf16 %v3610_v34, %v3609_v32  ;;  %v2359_v36 = vpop.f32.mrb[27].mxu0  ;;  %v4312_v32 = vld [vmem:[#allocation2 + $0x164] ss:$16 sps:$4 sm:$0xff]  }
 0x457   :  { %v2527_v37 = vpack.c.bf16 %v2359_v36, %v2356_v33 }
 0x459   :  { %2579 = vmatpush1.bf16.msra.mxu0 %v2527_v37 }
 0x45a   :  { %2580 = vmatprep.subr.bf16.mxu0 %v4469_v28 }
 0x45d   :  { %2581 = vmatpush1.bf16.msra.mxu0 %v2528_v35 }
 0x45e   :  { %2582 = vmatprep.subr.bf16.mxu0 %v4469_v28 }
 0x463   :  { %v3613_v38 = vpop.f32.mrb[28].mxu0 }
 0x464   :  { %v2372_v39 = vpop.f32.mrb[29].mxu0 }
 0x465   :  { %v3614_v40 = vpop.f32.mrb[30].mxu0 }
 0x466   :  { %v2530_v41 = vpack.c.bf16 %v3614_v40, %v3613_v38  ;;  %v2375_v42 = vpop.f32.mrb[31].mxu0  ;;  %v4314_v40 = vld [vmem:[#allocation2 + $0x184] ss:$16 sps:$4 sm:$0xff]  }
 0x467   :  { %v2529_v43 = vpack.c.bf16 %v2375_v42, %v2372_v39  ;;  %v4313_v39 = vld [vmem:[#allocation2 + $0x160] ss:$16 sps:$4 sm:$0xff]   ;;  %v4316_v42 = vld [vmem:[#allocation2 + $0x1a4] ss:$16 sps:$4 sm:$0xff]  }
 0x469   :  { %2583 = vmatpush1.bf16.msra.mxu0 %v2529_v43 }
 0x46a   :  { %2584 = vmatprep.subr.bf16.mxu0 %v4469_v28 }
 0x46d   :  { %2585 = vmatpush1.bf16.msra.mxu0 %v2530_v41  ;;  %v4315_v41 = vld [vmem:[#allocation2 + $0x180] ss:$16 sps:$4 sm:$0xff]  }
 0x46e   :  { %2843 = vmatprep.subr.bf16.mxu0 %v4469_v28 }
 0x470   :  { %2587 = vmatmul.mubr.bf16.vlgmr.msra.gmra.mrb[60].mxu0 %v4291_v44 }
 0x471   :  { %2594 = vmatprep.mubr.bf16.mxu0 %v4292_v45 }
 0x473   :  { %v3617_v46 = vpop.f32.mrb[32].mxu0 }
 0x474   :  { %v2388_v47 = vpop.f32.mrb[33].mxu0 }
 0x475   :  { %v3618_v48 = vpop.f32.mrb[34].mxu0 }
 0x476   :  { %v2532_v49 = vpack.c.bf16 %v3618_v48, %v3617_v46  ;;  %v2391_v50 = vpop.f32.mrb[35].mxu0 }
 0x477   :  { %v2531_v51 = vpack.c.bf16 %v2391_v50, %v2388_v47  ;;  %v4318_v50 = vld [vmem:[#allocation2 + $0x1c4] ss:$16 sps:$4 sm:$0xff]  }
 0x478   :  { %2595 = vmatmul.mubr.bf16.gmra.mrb[64].mxu0 %v4293_v52  ;;  %v4320_v52 = vld [vmem:[#allocation2 + $0x1e4] ss:$16 sps:$4 sm:$0xff]  }
 0x479   :  { %2844 = vmatpush1.bf16.msra.mxu0 %v2531_v51  ;;  %2602 = vmatprep.mubr.bf16.mxu0 %v4294_v53  ;;  %v4319_v51 = vld [vmem:[#allocation2 + $0x1c0] ss:$16 sps:$4 sm:$0xff]  }
 0x47a   :  { %2845 = vmatprep.subr.bf16.mxu0 %v4469_v28 }
 0x47d   :  { %2846 = vmatpush1.bf16.msra.mxu0 %v2532_v49  ;;  %v4317_v49 = vld [vmem:[#allocation2 + $0x1a0] ss:$16 sps:$4 sm:$0xff]  }
 0x47e   :  { %2847 = vmatprep.subr.bf16.mxu0 %v4469_v28 }
 0x480   :  { %2603 = vmatmul.mubr.bf16.gmra.mrb[68].mxu0 %v4295_v54 }
 0x481   :  { %2610 = vmatprep.mubr.bf16.mxu0 %v4296_v55 }
 0x483   :  { %v3621_v56 = vpop.f32.mrb[36].mxu0 }
 0x484   :  { %v2404_v57 = vpop.f32.mrb[37].mxu0 }
 0x485   :  { %v3622_v58 = vpop.f32.mrb[38].mxu0 }
 0x486   :  { %v2534_v59 = vpack.c.bf16 %v3622_v58, %v3621_v56  ;;  %v2407_v60 = vpop.f32.mrb[39].mxu0 }
 0x487   :  { %v2533_v61 = vpack.c.bf16 %v2407_v60, %v2404_v57  ;;  %v4322_v60 = vld [vmem:[#allocation2 + $0x204] ss:$16 sps:$4 sm:$0xff]  }
 0x488   :  { %2611 = vmatmul.mubr.bf16.gmra.mrb[72].mxu0 %v4297_v62  ;;  %v4324_v62 = vld [vmem:[#allocation2 + $0x224] ss:$16 sps:$4 sm:$0xff]  }
 0x489   :  { %2848 = vmatpush1.bf16.msra.mxu0 %v2533_v61  ;;  %2618 = vmatprep.mubr.bf16.mxu0 %v4298_v63  ;;  %v4323_v61 = vld [vmem:[#allocation2 + $0x200] ss:$16 sps:$4 sm:$0xff]  }
 0x48a   :  { %2849 = vmatprep.subr.bf16.mxu0 %v4469_v28  ;;  %v4325_v63 = vld [vmem:[#allocation2 + $0x220] ss:$16 sps:$4 sm:$0xff]  }
 0x48d   :  { %2850 = vmatpush1.bf16.msra.mxu0 %v2534_v59  ;;  %v4321_v59 = vld [vmem:[#allocation2 + $0x1e0] ss:$16 sps:$4 sm:$0xff]  }
 0x48e   :  { %2851 = vmatprep.subr.bf16.mxu0 %v4469_v28 }
 0x490   :  { %2619 = vmatmul.mubr.bf16.gmra.mrb[76].mxu0 %v4299_v0  ;;  %v4326_v0 = vld [vmem:[#allocation2 + $0x244] ss:$16 sps:$4 sm:$0xff]  }
 0x491   :  { %2626 = vmatprep.mubr.bf16.mxu0 %v4300_v1  ;;  %v4327_v1 = vld [vmem:[#allocation2 + $0x240] ss:$16 sps:$4 sm:$0xff]  }
 0x493   :  { %v3625_v2 = vpop.f32.mrb[40].mxu0 }
 0x494   :  { %v2420_v3 = vpop.f32.mrb[41].mxu0 }
 0x495   :  { %v3626_v4 = vpop.f32.mrb[42].mxu0 }
 0x496   :  { %v2536_v5 = vpack.c.bf16 %v3626_v4, %v3625_v2  ;;  %v2423_v6 = vpop.f32.mrb[43].mxu0  ;;  %v4328_v2 = vld [vmem:[#allocation2 + $0x264] ss:$16 sps:$4 sm:$0xff]  }
 0x497   :  { %v2535_v8 = vpack.c.bf16 %v2423_v6, %v2420_v3  ;;  %v4329_v3 = vld [vmem:[#allocation2 + $0x260] ss:$16 sps:$4 sm:$0xff]   ;;  %v4330_v4 = vld [vmem:[#allocation2 + $0x284] ss:$16 sps:$4 sm:$0xff]  }
 0x498   :  { %2627 = vmatmul.mubr.bf16.gmra.mrb[80].mxu0 %v4301_v9  ;;  %v4333_v6 = vld [vmem:[#allocation2 + $0x2a0] ss:$16 sps:$4 sm:$0xff]  }
 0x499   :  { %2852 = vmatpush1.bf16.msra.mxu0 %v2535_v8  ;;  %2634 = vmatprep.mubr.bf16.mxu0 %v4302_v10  ;;  %v4334_v8 = vld [vmem:[#allocation2 + $0x2c4] ss:$16 sps:$4 sm:$0xff]   ;;  %v4335_v9 = vld [vmem:[#allocation2 + $0x2c0] ss:$16 sps:$4 sm:$0xff]  }
 0x49a   :  { %2853 = vmatprep.subr.bf16.mxu0 %v4469_v28  ;;  %v4336_v10 = vld [vmem:[#allocation2 + $0x2e4] ss:$16 sps:$4 sm:$0xff]  }
 0x49d   :  { %2854 = vmatpush1.bf16.msra.mxu0 %v2536_v5  ;;  %v4331_v5 = vld [vmem:[#allocation2 + $0x280] ss:$16 sps:$4 sm:$0xff]  }
 0x49e   :  { %2855 = vmatprep.subr.bf16.mxu0 %v4469_v28 }
 0x4a0   :  { %2635 = vmatmul.mubr.bf16.gmra.mrb[84].mxu0 %v4303_v11  ;;  %v4337_v11 = vld [vmem:[#allocation2 + $0x2e0] ss:$16 sps:$4 sm:$0xff]  }
 0x4a1   :  { %2642 = vmatprep.mubr.bf16.mxu0 %v4304_v12  ;;  %v4338_v12 = vld [vmem:[#allocation2 + $0x304] ss:$16 sps:$4 sm:$0xff]  }
 0x4a3   :  { %v3629_v13 = vpop.f32.mrb[44].mxu0 }
 0x4a4   :  { %v2436_v7 = vpop.f32.mrb[45].mxu0 }
 0x4a5   :  { %v3630_v14 = vpop.f32.mrb[46].mxu0 }
 0x4a6   :  { %v2538_v15 = vpack.c.bf16 %v3630_v14, %v3629_v13  ;;  %v2439_v16 = vpop.f32.mrb[47].mxu0  ;;  %v4339_v13 = vld [vmem:[#allocation2 + $0x300] ss:$16 sps:$4 sm:$0xff]  }
 0x4a7   :  { %v2537_v17 = vpack.c.bf16 %v2439_v16, %v2436_v7  ;;  %v4340_v7 = vld [vmem:[#allocation2 + $0x324] ss:$16 sps:$4 sm:$0xff]   ;;  %v4341_v14 = vld [vmem:[#allocation2 + $0x320] ss:$16 sps:$4 sm:$0xff]  }
 0x4a8   :  { %2643 = vmatmul.mubr.bf16.gmra.mrb[88].mxu0 %v4305_v18  ;;  %v4343_v16 = vld [vmem:[#allocation2 + $0x340] ss:$16 sps:$4 sm:$0xff]  }
 0x4a9   :  { %2856 = vmatpush1.bf16.msra.mxu0 %v2537_v17  ;;  %2650 = vmatprep.mubr.bf16.mxu0 %v4306_v19  ;;  %v4344_v17 = vld [vmem:[#allocation2 + $0x364] ss:$16 sps:$4 sm:$0xff]   ;;  %v4345_v18 = vld [vmem:[#allocation2 + $0x360] ss:$16 sps:$4 sm:$0xff]  }
 0x4aa   :  { %2857 = vmatprep.subr.bf16.mxu0 %v4469_v28  ;;  %v4346_v19 = vld [vmem:[#allocation2 + $0x384] ss:$16 sps:$4 sm:$0xff]  }
 0x4ad   :  { %2858 = vmatpush1.bf16.msra.mxu0 %v2538_v15  ;;  %v4342_v15 = vld [vmem:[#allocation2 + $0x344] ss:$16 sps:$4 sm:$0xff]  }
 0x4ae   :  { %2859 = vmatprep.subr.bf16.mxu0 %v4469_v28 }
 0x4b0   :  { %2651 = vmatmul.mubr.bf16.gmra.mrb[92].mxu0 %v4307_v20  ;;  %v4347_v20 = vld [vmem:[#allocation2 + $0x380] ss:$16 sps:$4 sm:$0xff]  }
 0x4b1   :  { %2658 = vmatprep.mubr.bf16.mxu0 %v4308_v21  ;;  %v4348_v21 = vld [vmem:[#allocation2 + $0x3a4] ss:$16 sps:$4 sm:$0xff]  }
 0x4b3   :  { %v3633_v22 = vpop.f32.mrb[48].mxu0 }
 0x4b4   :  { %v2452_v23 = vpop.f32.mrb[49].mxu0 }
 0x4b5   :  { %v3634_v24 = vpop.f32.mrb[50].mxu0 }
 0x4b6   :  { %v2540_v25 = vpack.c.bf16 %v3634_v24, %v3633_v22  ;;  %v2455_v26 = vpop.f32.mrb[51].mxu0  ;;  %v4349_v22 = vld [vmem:[#allocation2 + $0x3a0] ss:$16 sps:$4 sm:$0xff]  }
 0x4b7   :  { %v2539_v27 = vpack.c.bf16 %v2455_v26, %v2452_v23  ;;  %v4350_v23 = vld [vmem:[#allocation2 + $0x3c4] ss:$16 sps:$4 sm:$0xff]   ;;  %v4351_v24 = vld [vmem:[#allocation2 + $0x3c0] ss:$16 sps:$4 sm:$0xff]  }
 0x4b8   :  { %2659 = vmatmul.mubr.bf16.gmra.mrb[96].mxu0 %v4309_v29  ;;  %v4353_v26 = vld [vmem:[#allocation2 + $0x3e0] ss:$16 sps:$4 sm:$0xff]   ;;  %v4355_v29 = vld [vmem:[#allocation2 + $0x8] ss:$16 sps:$4 sm:$0xff]  }
 0x4b9   :  { %2860 = vmatpush1.bf16.msra.mxu0 %v2539_v27  ;;  %2666 = vmatprep.mubr.bf16.mxu0 %v4310_v30  ;;  %v4354_v27 = vld [vmem:[#allocation2 + $0xc] ss:$16 sps:$4 sm:$0xff]  }
 0x4ba   :  { %2861 = vmatprep.subr.bf16.mxu0 %v4469_v28  ;;  %v4356_v30 = vld [vmem:[#allocation2 + $0x2c] ss:$16 sps:$4 sm:$0xff]  }
 0x4bd   :  { %2862 = vmatpush1.bf16.msra.mxu0 %v2540_v25  ;;  %v4352_v25 = vld [vmem:[#allocation2 + $0x3e4] ss:$16 sps:$4 sm:$0xff]  }
 0x4be   :  { %2863 = vmatprep.subr.bf16.mxu0 %v4469_v28 }
 0x4c0   :  { %2667 = vmatmul.mubr.bf16.gmra.mrb[100].mxu0 %v4311_v31  ;;  %v4357_v31 = vld [vmem:[#allocation2 + $0x28] ss:$16 sps:$4 sm:$0xff]  }
 0x4c1   :  { %2674 = vmatprep.mubr.bf16.mxu0 %v4312_v32  ;;  %v4358_v32 = vld [vmem:[#allocation2 + $0x4c] ss:$16 sps:$4 sm:$0xff]  }
 0x4c3   :  { %v3637_v33 = vpop.f32.mrb[52].mxu0 }
 0x4c4   :  { %v2468_v34 = vpop.f32.mrb[53].mxu0 }
 0x4c5   :  { %v3638_v35 = vpop.f32.mrb[54].mxu0 }
 0x4c6   :  { %v2542_v36 = vpack.c.bf16 %v3638_v35, %v3637_v33  ;;  %v2471_v37 = vpop.f32.mrb[55].mxu0  ;;  %v4359_v33 = vld [vmem:[#allocation2 + $0x48] ss:$16 sps:$4 sm:$0xff]  }
 0x4c7   :  { %v2541_v38 = vpack.c.bf16 %v2471_v37, %v2468_v34  ;;  %v4360_v34 = vld [vmem:[#allocation2 + $0x6c] ss:$16 sps:$4 sm:$0xff]   ;;  %v4361_v35 = vld [vmem:[#allocation2 + $0x68] ss:$16 sps:$4 sm:$0xff]  }
 0x4c8   :  { %2675 = vmatmul.mubr.bf16.gmra.mrb[104].mxu0 %v4313_v39  ;;  %v4363_v37 = vld [vmem:[#allocation2 + $0x88] ss:$16 sps:$4 sm:$0xff]  }
 0x4c9   :  { %2864 = vmatpush1.bf16.msra.mxu0 %v2541_v38  ;;  %2682 = vmatprep.mubr.bf16.mxu0 %v4314_v40  ;;  %v4364_v38 = vld [vmem:[#allocation2 + $0xac] ss:$16 sps:$4 sm:$0xff]   ;;  %v4365_v39 = vld [vmem:[#allocation2 + $0xa8] ss:$16 sps:$4 sm:$0xff]  }
 0x4ca   :  { %2865 = vmatprep.subr.bf16.mxu0 %v4469_v28  ;;  %v4366_v40 = vld [vmem:[#allocation2 + $0xcc] ss:$16 sps:$4 sm:$0xff]  }
 0x4cd   :  { %2866 = vmatpush1.bf16.msra.mxu0 %v2542_v36  ;;  %v4362_v36 = vld [vmem:[#allocation2 + $0x8c] ss:$16 sps:$4 sm:$0xff]  }
 0x4ce   :  { %2867 = vmatprep.subr.bf16.mxu0 %v4469_v28 }
 0x4d0   :  { %2683 = vmatmul.mubr.bf16.gmra.mrb[108].mxu0 %v4315_v41  ;;  %v4367_v41 = vld [vmem:[#allocation2 + $0xc8] ss:$16 sps:$4 sm:$0xff]  }
 0x4d1   :  { %2690 = vmatprep.mubr.bf16.mxu0 %v4316_v42  ;;  %v4368_v42 = vld [vmem:[#allocation2 + $0xec] ss:$16 sps:$4 sm:$0xff]  }
 0x4d3   :  { %v3641_v43 = vpop.f32.mrb[56].mxu0 }
 0x4d4   :  { %v2484_v44 = vpop.f32.mrb[57].mxu0 }
 0x4d5   :  { %v3642_v45 = vpop.f32.mrb[58].mxu0 }
 0x4d6   :  { %v2544_v46 = vpack.c.bf16 %v3642_v45, %v3641_v43  ;;  %v2487_v47 = vpop.f32.mrb[59].mxu0  ;;  %v4369_v43 = vld [vmem:[#allocation2 + $0xe8] ss:$16 sps:$4 sm:$0xff]  }
 0x4d7   :  { %v2543_v48 = vpack.c.bf16 %v2487_v47, %v2484_v44  ;;  %v4370_v44 = vld [vmem:[#allocation2 + $0x10c] ss:$16 sps:$4 sm:$0xff]   ;;  %v4371_v45 = vld [vmem:[#allocation2 + $0x108] ss:$16 sps:$4 sm:$0xff]  }
 0x4d8   :  { %2691 = vmatmul.mubr.bf16.gmra.mrb[112].mxu0 %v4317_v49  ;;  %v4373_v47 = vld [vmem:[#allocation2 + $0x128] ss:$16 sps:$4 sm:$0xff]  }
 0x4d9   :  { %2868 = vmatpush1.bf16.msra.mxu0 %v2543_v48  ;;  %2698 = vmatprep.mubr.bf16.mxu0 %v4318_v50  ;;  %v4374_v48 = vld [vmem:[#allocation2 + $0x14c] ss:$16 sps:$4 sm:$0xff]   ;;  %v4375_v49 = vld [vmem:[#allocation2 + $0x148] ss:$16 sps:$4 sm:$0xff]  }
 0x4da   :  { %2869 = vmatprep.subr.bf16.mxu0 %v4469_v28  ;;  %v4376_v50 = vld [vmem:[#allocation2 + $0x16c] ss:$16 sps:$4 sm:$0xff]  }
 0x4dd   :  { %2870 = vmatpush1.bf16.msra.mxu0 %v2544_v46  ;;  %v4372_v46 = vld [vmem:[#allocation2 + $0x12c] ss:$16 sps:$4 sm:$0xff]  }
 0x4de   :  { %2871 = vmatprep.subr.bf16.mxu0 %v4469_v28 }
 0x4e0   :  { %2699 = vmatmul.mubr.bf16.gmra.mrb[116].mxu0 %v4319_v51  ;;  %v4377_v51 = vld [vmem:[#allocation2 + $0x168] ss:$16 sps:$4 sm:$0xff]  }
 0x4e1   :  { %2706 = vmatprep.mubr.bf16.mxu0 %v4320_v52  ;;  %v4378_v52 = vld [vmem:[#allocation2 + $0x18c] ss:$16 sps:$4 sm:$0xff]  }
 0x4e3   :  { %v3645_v53 = vpop.f32.mrb[192].mxu1 }
 0x4e4   :  { %v2500_v54 = vpop.f32.mrb[193].mxu1 }
 0x4e5   :  { %v3646_v55 = vpop.f32.mrb[194].mxu1 }
 0x4e6   :  { %v2546_v56 = vpack.c.bf16 %v3646_v55, %v3645_v53  ;;  %v2503_v57 = vpop.f32.mrb[195].mxu1  ;;  %v4379_v53 = vld [vmem:[#allocation2 + $0x188] ss:$16 sps:$4 sm:$0xff]  }
 0x4e7   :  { %v2545_v58 = vpack.c.bf16 %v2503_v57, %v2500_v54  ;;  %v4380_v54 = vld [vmem:[#allocation2 + $0x1ac] ss:$16 sps:$4 sm:$0xff]   ;;  %v4381_v55 = vld [vmem:[#allocation2 + $0x1a8] ss:$16 sps:$4 sm:$0xff]  }
 0x4e8   :  { %2707 = vmatmul.mubr.bf16.gmra.mrb[120].mxu0 %v4321_v59  ;;  %v4383_v57 = vld [vmem:[#allocation2 + $0x1c8] ss:$16 sps:$4 sm:$0xff]  }
 0x4e9   :  { %2872 = vmatpush1.bf16.msra.mxu0 %v2545_v58  ;;  %2714 = vmatprep.mubr.bf16.mxu0 %v4322_v60  ;;  %v4384_v58 = vld [vmem:[#allocation2 + $0x1ec] ss:$16 sps:$4 sm:$0xff]   ;;  %v4385_v59 = vld [vmem:[#allocation2 + $0x1e8] ss:$16 sps:$4 sm:$0xff]  }
 0x4ea   :  { %2873 = vmatprep.subr.bf16.mxu0 %v4469_v28  ;;  %v4332_v28 = vld [vmem:[#allocation2 + $0x2a4] ss:$16 sps:$4 sm:$0xff]   ;;  %v4386_v60 = vld [vmem:[#allocation2 + $0x20c] ss:$16 sps:$4 sm:$0xff]  }
 0x4ed   :  { %2874 = vmatpush1.bf16.msra.mxu0 %v2546_v56  ;;  %v4382_v56 = vld [vmem:[#allocation2 + $0x1cc] ss:$16 sps:$4 sm:$0xff]  }
 0x4f0   :  { %2715 = vmatmul.mubr.bf16.gmra.mrb[124].mxu0 %v4323_v61  ;;  %v4387_v61 = vld [vmem:[#allocation2 + $0x208] ss:$16 sps:$4 sm:$0xff]  }
 0x4f1   :  { %2722 = vmatprep.mubr.bf16.mxu0 %v4324_v62  ;;  %v4388_v62 = vld [vmem:[#allocation2 + $0x22c] ss:$16 sps:$4 sm:$0xff]  }
 0x4f8   :  { %2723 = vmatmul.mubr.bf16.gmra.mrb[128].mxu0 %v4325_v63  ;;  %v4389_v63 = vld [vmem:[#allocation2 + $0x228] ss:$16 sps:$4 sm:$0xff]  }
 0x4f9   :  { %2730 = vmatprep.mubr.bf16.mxu0 %v4326_v0  ;;  %v4390_v0 = vld [vmem:[#allocation2 + $0x24c] ss:$16 sps:$4 sm:$0xff]  }
 0x500   :  { %2731 = vmatmul.mubr.bf16.gmra.mrb[132].mxu0 %v4327_v1  ;;  %v4391_v1 = vld [vmem:[#allocation2 + $0x248] ss:$16 sps:$4 sm:$0xff]  }
 0x501   :  { %2738 = vmatprep.mubr.bf16.mxu0 %v4328_v2  ;;  %v4392_v2 = vld [vmem:[#allocation2 + $0x26c] ss:$16 sps:$4 sm:$0xff]  }
 0x508   :  { %2739 = vmatmul.mubr.bf16.gmra.mrb[136].mxu0 %v4329_v3  ;;  %v4393_v3 = vld [vmem:[#allocation2 + $0x268] ss:$16 sps:$4 sm:$0xff]  }
 0x509   :  { %2746 = vmatprep.mubr.bf16.mxu0 %v4330_v4  ;;  %v4394_v4 = vld [vmem:[#allocation2 + $0x28c] ss:$16 sps:$4 sm:$0xff]  }
 0x510   :  { %2747 = vmatmul.mubr.bf16.gmra.mrb[140].mxu0 %v4331_v5  ;;  %v4395_v5 = vld [vmem:[#allocation2 + $0x288] ss:$16 sps:$4 sm:$0xff]  }
 0x511   :  { %2754 = vmatprep.mubr.bf16.mxu0 %v4332_v28  ;;  %v4396_v28 = vld [vmem:[#allocation2 + $0x2ac] ss:$16 sps:$4 sm:$0xff]  }
 0x518   :  { %2755 = vmatmul.mubr.bf16.gmra.mrb[144].mxu0 %v4333_v6  ;;  %v4397_v6 = vld [vmem:[#allocation2 + $0x2a8] ss:$16 sps:$4 sm:$0xff]  }
 0x519   :  { %2762 = vmatprep.mubr.bf16.mxu0 %v4334_v8  ;;  %v4398_v8 = vld [vmem:[#allocation2 + $0x2cc] ss:$16 sps:$4 sm:$0xff]  }
 0x520   :  { %2763 = vmatmul.mubr.bf16.gmra.mrb[148].mxu0 %v4335_v9  ;;  %v4399_v9 = vld [vmem:[#allocation2 + $0x2c8] ss:$16 sps:$4 sm:$0xff]  }
 0x521   :  { %2770 = vmatprep.mubr.bf16.mxu0 %v4336_v10  ;;  %v4400_v10 = vld [vmem:[#allocation2 + $0x2ec] ss:$16 sps:$4 sm:$0xff]  }
 0x528   :  { %2771 = vmatmul.mubr.bf16.gmra.mrb[152].mxu0 %v4337_v11  ;;  %v4401_v11 = vld [vmem:[#allocation2 + $0x2e8] ss:$16 sps:$4 sm:$0xff]  }
 0x529   :  { %2778 = vmatprep.mubr.bf16.mxu0 %v4338_v12  ;;  %v4402_v12 = vld [vmem:[#allocation2 + $0x30c] ss:$16 sps:$4 sm:$0xff]  }
 0x530   :  { %2779 = vmatmul.mubr.bf16.gmra.mrb[156].mxu0 %v4339_v13  ;;  %v4403_v13 = vld [vmem:[#allocation2 + $0x308] ss:$16 sps:$4 sm:$0xff]  }
 0x531   :  { %2786 = vmatprep.mubr.bf16.mxu0 %v4340_v7  ;;  %v4404_v7 = vld [vmem:[#allocation2 + $0x32c] ss:$16 sps:$4 sm:$0xff]  }
 0x538   :  { %2787 = vmatmul.mubr.bf16.gmra.mrb[160].mxu0 %v4341_v14  ;;  %v4405_v14 = vld [vmem:[#allocation2 + $0x328] ss:$16 sps:$4 sm:$0xff]  }
 0x539   :  { %2794 = vmatprep.mubr.bf16.mxu0 %v4342_v15  ;;  %v4406_v15 = vld [vmem:[#allocation2 + $0x34c] ss:$16 sps:$4 sm:$0xff]  }
 0x540   :  { %2795 = vmatmul.mubr.bf16.gmra.mrb[164].mxu0 %v4343_v16  ;;  %v4407_v16 = vld [vmem:[#allocation2 + $0x348] ss:$16 sps:$4 sm:$0xff]  }
 0x541   :  { %2802 = vmatprep.mubr.bf16.mxu0 %v4344_v17  ;;  %v4820_v17 = vld [vmem:[%s4903_s5] ss:$0 sm:$0xff]  ;;  %s4470_s5 = smov [#allocation5]  }
 0x542   :  { %s3201_s21 = sshll.u32 %s4470_s5, 4  ;;  %s3202_s21 = int_to_ptr.vmem [resolvable:$true] %s3201_s21 }
 0x543   :  { %s4440_s22 = scalar_lea.vmem %s3202_s21, 8192  ;;  %p4445_p9 = scmp.lt.s32.totalorder %s3202_s21, %s3202_s21 }
 0x544   :  { %p4441_p8 = scmp.ne.s32.totalorder %s3202_s21, %s4440_s22  ;;  %p4446_p10 = scmp.lt.s32.totalorder %s4440_s22, %s4440_s22 }
 0x546   :  { %p4447_p11 = por %p4446_p10, %p4445_p9 }
 0x548   :  { %2803 = vmatmul.mubr.bf16.gmra.mrb[168].mxu0 %v4345_v18  ;;  %v4408_v18 = vld [vmem:[#allocation2 + $0x36c] ss:$16 sps:$4 sm:$0xff]   ;;  %p4448_p12 = pnand %p4447_p11, %p4441_p8 }
 0x549   :  { %2810 = vmatprep.mubr.bf16.mxu0 %v4346_v19 }
 0x550   :  { %2811 = vmatmul.mubr.bf16.gmra.mrb[172].mxu0 %v4347_v20 }
 0x551   :  { %2818 = vmatprep.mubr.bf16.mxu0 %v4348_v21 }
 0x558   :  { %2819 = vmatmul.mubr.bf16.gmra.mrb[176].mxu0 %v4349_v22 }
 0x559   :  { %2826 = vmatprep.mubr.bf16.mxu0 %v4350_v23 }
 0x560   :  { %2827 = vmatmul.mubr.bf16.gmra.mrb[180].mxu0 %v4351_v24 }
 0x561   :  { %2834 = vmatprep.mubr.bf16.mxu0 %v4352_v25  ;;  %v4409_v25 = vld [vmem:[#allocation2 + $0x368] ss:$16 sps:$4 sm:$0xff]  }
 0x568   :  { %2835 = vmatmul.mubr.bf16.gmra.mrb[184].mxu0 %v4353_v26  ;;  %v4410_v26 = vld [vmem:[#allocation2 + $0x38c] ss:$16 sps:$4 sm:$0xff]  }
 0x569   :  { %2875 = vmatprep.mubr.bf16.mxu0 %v4354_v27 }
 0x570   :  { %2876 = vmatmul.mubr.bf16.vlgmr.msra.gmra.mrb[60].mxu0 %v4355_v29 }
 0x571   :  { %2883 = vmatprep.mubr.bf16.mxu0 %v4356_v30 }
 0x578   :  { %2884 = vmatmul.mubr.bf16.gmra.mrb[64].mxu0 %v4357_v31 }
 0x579   :  { %2891 = vmatprep.mubr.bf16.mxu0 %v4358_v32 }
 0x580   :  { %2892 = vmatmul.mubr.bf16.gmra.mrb[68].mxu0 %v4359_v33 }
 0x581   :  { %2899 = vmatprep.mubr.bf16.mxu0 %v4360_v34  ;;  %v4411_v34 = vld [vmem:[#allocation2 + $0x388] ss:$16 sps:$4 sm:$0xff]  }
 0x588   :  { %2900 = vmatmul.mubr.bf16.gmra.mrb[72].mxu0 %v4361_v35  ;;  %v4412_v35 = vld [vmem:[#allocation2 + $0x3ac] ss:$16 sps:$4 sm:$0xff]  }
 0x589   :  { %2907 = vmatprep.mubr.bf16.mxu0 %v4362_v36 }
 0x590   :  { %2908 = vmatmul.mubr.bf16.gmra.mrb[76].mxu0 %v4363_v37 }
 0x591   :  { %2915 = vmatprep.mubr.bf16.mxu0 %v4364_v38 }
 0x598   :  { %2916 = vmatmul.mubr.bf16.gmra.mrb[80].mxu0 %v4365_v39 }
 0x599   :  { %2923 = vmatprep.mubr.bf16.mxu0 %v4366_v40 }
 0x5a0   :  { %2924 = vmatmul.mubr.bf16.gmra.mrb[84].mxu0 %v4367_v41 }
 0x5a1   :  { %2931 = vmatprep.mubr.bf16.mxu0 %v4368_v42  ;;  %v4413_v42 = vld [vmem:[#allocation2 + $0x3a8] ss:$16 sps:$4 sm:$0xff]  }
 0x5a8   :  { %2932 = vmatmul.mubr.bf16.gmra.mrb[88].mxu0 %v4369_v43  ;;  %v4414_v43 = vld [vmem:[#allocation2 + $0x3cc] ss:$16 sps:$4 sm:$0xff]  }
 0x5a9   :  { %2939 = vmatprep.mubr.bf16.mxu0 %v4370_v44 }
 0x5b0   :  { %2940 = vmatmul.mubr.bf16.gmra.mrb[92].mxu0 %v4371_v45 }
 0x5b1   :  { %2947 = vmatprep.mubr.bf16.mxu0 %v4372_v46 }
 0x5b8   :  { %2948 = vmatmul.mubr.bf16.gmra.mrb[96].mxu0 %v4373_v47 }
 0x5b9   :  { %2955 = vmatprep.mubr.bf16.mxu0 %v4374_v48 }
 0x5c0   :  { %2956 = vmatmul.mubr.bf16.gmra.mrb[100].mxu0 %v4375_v49 }
 0x5c1   :  { %2963 = vmatprep.mubr.bf16.mxu0 %v4376_v50  ;;  %v4415_v50 = vld [vmem:[#allocation2 + $0x3c8] ss:$16 sps:$4 sm:$0xff]  }
 0x5c8   :  { %2964 = vmatmul.mubr.bf16.gmra.mrb[104].mxu0 %v4377_v51  ;;  %v4416_v51 = vld [vmem:[#allocation2 + $0x3ec] ss:$16 sps:$4 sm:$0xff]  }
 0x5c9   :  { %2971 = vmatprep.mubr.bf16.mxu0 %v4378_v52 }
 0x5d0   :  { %2972 = vmatmul.mubr.bf16.gmra.mrb[108].mxu0 %v4379_v53 }
 0x5d1   :  { %2979 = vmatprep.mubr.bf16.mxu0 %v4380_v54 }
 0x5d8   :  { %2980 = vmatmul.mubr.bf16.gmra.mrb[112].mxu0 %v4381_v55 }
 0x5d9   :  { %2987 = vmatprep.mubr.bf16.mxu0 %v4382_v56 }
 0x5e0   :  { %2988 = vmatmul.mubr.bf16.gmra.mrb[116].mxu0 %v4383_v57 }
 0x5e1   :  { %2995 = vmatprep.mubr.bf16.mxu0 %v4384_v58  ;;  %v4417_v58 = vld [vmem:[#allocation2 + $0x3e8] ss:$16 sps:$4 sm:$0xff]  }
 0x5e8   :  { %2996 = vmatmul.mubr.bf16.gmra.mrb[120].mxu0 %v4385_v59 }
 0x5e9   :  { %3003 = vmatprep.mubr.bf16.mxu0 %v4386_v60 }
 0x5f0   :  { %3004 = vmatmul.mubr.bf16.gmra.mrb[124].mxu0 %v4387_v61 }
 0x5f1   :  { %3011 = vmatprep.mubr.bf16.mxu0 %v4388_v62 }
 0x5f8   :  { %3012 = vmatmul.mubr.bf16.gmra.mrb[128].mxu0 %v4389_v63 }
 0x5f9   :  { %3019 = vmatprep.mubr.bf16.mxu0 %v4390_v0 }
 0x600   :  { %3020 = vmatmul.mubr.bf16.gmra.mrb[132].mxu0 %v4391_v1 }
 0x601   :  { %3027 = vmatprep.mubr.bf16.mxu0 %v4392_v2 }
 0x608   :  { %3028 = vmatmul.mubr.bf16.gmra.mrb[136].mxu0 %v4393_v3 }
 0x609   :  { %3035 = vmatprep.mubr.bf16.mxu0 %v4394_v4 }
 0x610   :  { %3036 = vmatmul.mubr.bf16.gmra.mrb[140].mxu0 %v4395_v5 }
 0x611   :  { %3043 = vmatprep.mubr.bf16.mxu0 %v4396_v28 }
 0x618   :  { %3044 = vmatmul.mubr.bf16.gmra.mrb[144].mxu0 %v4397_v6 }
 0x619   :  { %3051 = vmatprep.mubr.bf16.mxu0 %v4398_v8 }
 0x620   :  { %3052 = vmatmul.mubr.bf16.gmra.mrb[148].mxu0 %v4399_v9 }
 0x621   :  { %3059 = vmatprep.mubr.bf16.mxu0 %v4400_v10 }
 0x628   :  { %3060 = vmatmul.mubr.bf16.gmra.mrb[152].mxu0 %v4401_v11 }
 0x629   :  { %3067 = vmatprep.mubr.bf16.mxu0 %v4402_v12 }
 0x630   :  { %3068 = vmatmul.mubr.bf16.gmra.mrb[156].mxu0 %v4403_v13 }
 0x631   :  { %3075 = vmatprep.mubr.bf16.mxu0 %v4404_v7 }
 0x638   :  { %3076 = vmatmul.mubr.bf16.gmra.mrb[160].mxu0 %v4405_v14 }
 0x639   :  { %3083 = vmatprep.mubr.bf16.mxu0 %v4406_v15 }
 0x640   :  { %3084 = vmatmul.mubr.bf16.gmra.mrb[164].mxu0 %v4407_v16 }
 0x641   :  { %3091 = vmatprep.mubr.bf16.mxu0 %v4408_v18 }
 0x643   :  { %v2877_v19 = vpop.f32.mrb[60].mxu0 }
 0x644   :  { %v3727_v20 = vadd.f32 %v4820_v17, %v2877_v19  ;;  %v2879_v21 = vpop.f32.mrb[61].mxu0 }
 0x645   :  { %v2880_v22 = vpop.f32.mrb[62].mxu0 }
 0x646   :  { %3132 = vst [vmem:[#allocation5] sm:$0xff] %v3727_v20  ;;  %v3728_v23 = vadd.f32 %v4820_v17, %v2880_v22  ;;  %v2882_v24 = vpop.f32.mrb[63].mxu0 }
 0x648   :  { %3133 = vst [vmem:[#allocation5 + $0x8] sm:$0xff] %v3728_v23  ;;  %3092 = vmatmul.mubr.bf16.gmra.mrb[168].mxu0 %v4409_v25 }
 0x649   :  { %3099 = vmatprep.mubr.bf16.mxu0 %v4410_v26 }
 0x64b   :  { %v2885_v27 = vpop.f32.mrb[64].mxu0 }
 0x64c   :  { %v3729_v29 = vadd.f32 %v4820_v17, %v2885_v27  ;;  %v2887_v30 = vpop.f32.mrb[65].mxu0 }
 0x64d   :  { %v2888_v31 = vpop.f32.mrb[66].mxu0 }
 0x64e   :  { %3134 = vst [vmem:[#allocation5 + $0x10] sm:$0xff] %v3729_v29  ;;  %v3730_v32 = vadd.f32 %v4820_v17, %v2888_v31  ;;  %v2890_v33 = vpop.f32.mrb[67].mxu0 }
 0x650   :  { %3135 = vst [vmem:[#allocation5 + $0x18] sm:$0xff] %v3730_v32  ;;  %3100 = vmatmul.mubr.bf16.gmra.mrb[172].mxu0 %v4411_v34 }
 0x651   :  { %3107 = vmatprep.mubr.bf16.mxu0 %v4412_v35 }
 0x653   :  { %v2893_v36 = vpop.f32.mrb[68].mxu0 }
 0x654   :  { %v3731_v37 = vadd.f32 %v4820_v17, %v2893_v36  ;;  %v2895_v38 = vpop.f32.mrb[69].mxu0 }
 0x655   :  { %v2896_v39 = vpop.f32.mrb[70].mxu0 }
 0x656   :  { %3136 = vst [vmem:[#allocation5 + $0x20] sm:$0xff] %v3731_v37  ;;  %v3732_v40 = vadd.f32 %v4820_v17, %v2896_v39  ;;  %v2898_v41 = vpop.f32.mrb[71].mxu0 }
 0x658   :  { %3137 = vst [vmem:[#allocation5 + $0x28] sm:$0xff] %v3732_v40  ;;  %3108 = vmatmul.mubr.bf16.gmra.mrb[176].mxu0 %v4413_v42 }
 0x659   :  { %3115 = vmatprep.mubr.bf16.mxu0 %v4414_v43 }
 0x65b   :  { %v2901_v44 = vpop.f32.mrb[72].mxu0 }
 0x65c   :  { %v3733_v45 = vadd.f32 %v4820_v17, %v2901_v44  ;;  %v2903_v46 = vpop.f32.mrb[73].mxu0 }
 0x65d   :  { %v2904_v47 = vpop.f32.mrb[74].mxu0 }
 0x65e   :  { %3138 = vst [vmem:[#allocation5 + $0x30] sm:$0xff] %v3733_v45  ;;  %v3734_v48 = vadd.f32 %v4820_v17, %v2904_v47  ;;  %v2906_v49 = vpop.f32.mrb[75].mxu0 }
 0x660   :  { %3139 = vst [vmem:[#allocation5 + $0x38] sm:$0xff] %v3734_v48  ;;  %3116 = vmatmul.mubr.bf16.gmra.mrb[180].mxu0 %v4415_v50 }
 0x661   :  { %3123 = vmatprep.mubr.bf16.mxu0 %v4416_v51 }
 0x663   :  { %v2909_v52 = vpop.f32.mrb[76].mxu0 }
 0x664   :  { %v3735_v53 = vadd.f32 %v4820_v17, %v2909_v52  ;;  %v2911_v54 = vpop.f32.mrb[77].mxu0 }
 0x665   :  { %v2912_v55 = vpop.f32.mrb[78].mxu0 }
 0x666   :  { %3140 = vst [vmem:[#allocation5 + $0x40] sm:$0xff] %v3735_v53  ;;  %v3736_v56 = vadd.f32 %v4820_v17, %v2912_v55  ;;  %v2914_v57 = vpop.f32.mrb[79].mxu0 }
 0x668   :  { %3141 = vst [vmem:[#allocation5 + $0x48] sm:$0xff] %v3736_v56  ;;  %3124 = vmatmul.mubr.bf16.gmra.mrb[184].mxu0 %v4417_v58 }
 0x66b   :  { %v2917_v59 = vpop.f32.mrb[80].mxu0 }
 0x66c   :  { %v3737_v60 = vadd.f32 %v4820_v17, %v2917_v59  ;;  %v2919_v61 = vpop.f32.mrb[81].mxu0 }
 0x66d   :  { %v2920_v62 = vpop.f32.mrb[82].mxu0 }
 0x66e   :  { %3142 = vst [vmem:[#allocation5 + $0x50] sm:$0xff] %v3737_v60  ;;  %v3738_v63 = vadd.f32 %v4820_v17, %v2920_v62  ;;  %v2922_v0 = vpop.f32.mrb[83].mxu0 }
 0x670   :  { %3143 = vst [vmem:[#allocation5 + $0x58] sm:$0xff] %v3738_v63 }
 0x673   :  { %v2925_v1 = vpop.f32.mrb[84].mxu0 }
 0x674   :  { %v3739_v2 = vadd.f32 %v4820_v17, %v2925_v1  ;;  %v2927_v3 = vpop.f32.mrb[85].mxu0 }
 0x675   :  { %v2928_v4 = vpop.f32.mrb[86].mxu0 }
 0x676   :  { %3144 = vst [vmem:[#allocation5 + $0x60] sm:$0xff] %v3739_v2  ;;  %v3740_v5 = vadd.f32 %v4820_v17, %v2928_v4  ;;  %v2930_v28 = vpop.f32.mrb[87].mxu0 }
 0x678   :  { %3145 = vst [vmem:[#allocation5 + $0x68] sm:$0xff] %v3740_v5 }
 0x67b   :  { %v2933_v6 = vpop.f32.mrb[88].mxu0 }
 0x67c   :  { %v3741_v8 = vadd.f32 %v4820_v17, %v2933_v6  ;;  %v2935_v9 = vpop.f32.mrb[89].mxu0 }
 0x67d   :  { %v2936_v10 = vpop.f32.mrb[90].mxu0 }
 0x67e   :  { %3146 = vst [vmem:[#allocation5 + $0x70] sm:$0xff] %v3741_v8  ;;  %v3742_v11 = vadd.f32 %v4820_v17, %v2936_v10  ;;  %v2938_v12 = vpop.f32.mrb[91].mxu0 }
 0x680   :  { %3147 = vst [vmem:[#allocation5 + $0x78] sm:$0xff] %v3742_v11 }
 0x683   :  { %v2941_v13 = vpop.f32.mrb[92].mxu0 }
 0x684   :  { %v3743_v7 = vadd.f32 %v4820_v17, %v2941_v13  ;;  %v2943_v14 = vpop.f32.mrb[93].mxu0 }
 0x685   :  { %v2944_v15 = vpop.f32.mrb[94].mxu0 }
 0x686   :  { %3148 = vst [vmem:[#allocation5 + $0x80] sm:$0xff] %v3743_v7  ;;  %v3744_v16 = vadd.f32 %v4820_v17, %v2944_v15  ;;  %v2946_v18 = vpop.f32.mrb[95].mxu0 }
 0x688   :  { %3149 = vst [vmem:[#allocation5 + $0x88] sm:$0xff] %v3744_v16 }
 0x68b   :  { %v2949_v19 = vpop.f32.mrb[96].mxu0 }
 0x68c   :  { %v3745_v20 = vadd.f32 %v4820_v17, %v2949_v19  ;;  %v2951_v21 = vpop.f32.mrb[97].mxu0 }
 0x68d   :  { %v2952_v22 = vpop.f32.mrb[98].mxu0 }
 0x68e   :  { %3150 = vst [vmem:[#allocation5 + $0x90] sm:$0xff] %v3745_v20  ;;  %v3746_v23 = vadd.f32 %v4820_v17, %v2952_v22  ;;  %v2954_v24 = vpop.f32.mrb[99].mxu0 }
 0x690   :  { %3151 = vst [vmem:[#allocation5 + $0x98] sm:$0xff] %v3746_v23 }
 0x693   :  { %v2957_v25 = vpop.f32.mrb[100].mxu0 }
 0x694   :  { %v3747_v26 = vadd.f32 %v4820_v17, %v2957_v25  ;;  %v2959_v27 = vpop.f32.mrb[101].mxu0 }
 0x695   :  { %v2960_v29 = vpop.f32.mrb[102].mxu0 }
 0x696   :  { %3152 = vst [vmem:[#allocation5 + $0xa0] sm:$0xff] %v3747_v26  ;;  %v3748_v30 = vadd.f32 %v4820_v17, %v2960_v29  ;;  %v2962_v31 = vpop.f32.mrb[103].mxu0 }
 0x698   :  { %3153 = vst [vmem:[#allocation5 + $0xa8] sm:$0xff] %v3748_v30 }
 0x69b   :  { %v2965_v32 = vpop.f32.mrb[104].mxu0 }
 0x69c   :  { %v3749_v33 = vadd.f32 %v4820_v17, %v2965_v32  ;;  %v2967_v34 = vpop.f32.mrb[105].mxu0 }
 0x69d   :  { %v2968_v35 = vpop.f32.mrb[106].mxu0 }
 0x69e   :  { %3154 = vst [vmem:[#allocation5 + $0xb0] sm:$0xff] %v3749_v33  ;;  %v3750_v36 = vadd.f32 %v4820_v17, %v2968_v35  ;;  %v2970_v37 = vpop.f32.mrb[107].mxu0 }
 0x6a0   :  { %3155 = vst [vmem:[#allocation5 + $0xb8] sm:$0xff] %v3750_v36 }
 0x6a3   :  { %v2973_v38 = vpop.f32.mrb[108].mxu0 }
 0x6a4   :  { %v3751_v39 = vadd.f32 %v4820_v17, %v2973_v38  ;;  %v2975_v40 = vpop.f32.mrb[109].mxu0 }
 0x6a5   :  { %v2976_v41 = vpop.f32.mrb[110].mxu0 }
 0x6a6   :  { %3156 = vst [vmem:[#allocation5 + $0xc0] sm:$0xff] %v3751_v39  ;;  %v3752_v42 = vadd.f32 %v4820_v17, %v2976_v41  ;;  %v2978_v43 = vpop.f32.mrb[111].mxu0 }
 0x6a8   :  { %3157 = vst [vmem:[#allocation5 + $0xc8] sm:$0xff] %v3752_v42 }
 0x6ab   :  { %v2981_v44 = vpop.f32.mrb[112].mxu0 }
 0x6ac   :  { %v3753_v45 = vadd.f32 %v4820_v17, %v2981_v44  ;;  %v2983_v46 = vpop.f32.mrb[113].mxu0 }
 0x6ad   :  { %v2984_v47 = vpop.f32.mrb[114].mxu0 }
 0x6ae   :  { %3158 = vst [vmem:[#allocation5 + $0xd0] sm:$0xff] %v3753_v45  ;;  %v3754_v48 = vadd.f32 %v4820_v17, %v2984_v47  ;;  %v2986_v49 = vpop.f32.mrb[115].mxu0 }
 0x6b0   :  { %3159 = vst [vmem:[#allocation5 + $0xd8] sm:$0xff] %v3754_v48 }
 0x6b3   :  { %v2989_v50 = vpop.f32.mrb[116].mxu0 }
 0x6b4   :  { %v3755_v51 = vadd.f32 %v4820_v17, %v2989_v50  ;;  %v2991_v52 = vpop.f32.mrb[117].mxu0 }
 0x6b5   :  { %v2992_v53 = vpop.f32.mrb[118].mxu0 }
 0x6b6   :  { %3160 = vst [vmem:[#allocation5 + $0xe0] sm:$0xff] %v3755_v51  ;;  %v3756_v54 = vadd.f32 %v4820_v17, %v2992_v53  ;;  %v2994_v55 = vpop.f32.mrb[119].mxu0 }
 0x6b8   :  { %3161 = vst [vmem:[#allocation5 + $0xe8] sm:$0xff] %v3756_v54 }
 0x6bb   :  { %v2997_v56 = vpop.f32.mrb[120].mxu0 }
 0x6bc   :  { %v3757_v57 = vadd.f32 %v4820_v17, %v2997_v56  ;;  %v2999_v58 = vpop.f32.mrb[121].mxu0 }
 0x6bd   :  { %v3000_v59 = vpop.f32.mrb[122].mxu0 }
 0x6be   :  { %3162 = vst [vmem:[#allocation5 + $0xf0] sm:$0xff] %v3757_v57  ;;  %v3758_v60 = vadd.f32 %v4820_v17, %v3000_v59  ;;  %v3002_v61 = vpop.f32.mrb[123].mxu0 }
 0x6c0   :  { %3163 = vst [vmem:[#allocation5 + $0xf8] sm:$0xff] %v3758_v60 }
 0x6c3   :  { %v3005_v62 = vpop.f32.mrb[124].mxu0 }
 0x6c4   :  { %v3759_v63 = vadd.f32 %v4820_v17, %v3005_v62  ;;  %v3007_v0 = vpop.f32.mrb[125].mxu0 }
 0x6c5   :  { %v3008_v1 = vpop.f32.mrb[126].mxu0 }
 0x6c6   :  { %3164 = vst [vmem:[#allocation5 + $0x100] sm:$0xff] %v3759_v63  ;;  %v3760_v2 = vadd.f32 %v4820_v17, %v3008_v1  ;;  %v3010_v3 = vpop.f32.mrb[127].mxu0 }
 0x6c8   :  { %3165 = vst [vmem:[#allocation5 + $0x108] sm:$0xff] %v3760_v2 }
 0x6cb   :  { %v3013_v4 = vpop.f32.mrb[128].mxu0 }
 0x6cc   :  { %v3761_v5 = vadd.f32 %v4820_v17, %v3013_v4  ;;  %v3015_v28 = vpop.f32.mrb[129].mxu0 }
 0x6cd   :  { %v3016_v6 = vpop.f32.mrb[130].mxu0 }
 0x6ce   :  { %3166 = vst [vmem:[#allocation5 + $0x110] sm:$0xff] %v3761_v5  ;;  %v3762_v8 = vadd.f32 %v4820_v17, %v3016_v6  ;;  %v3018_v9 = vpop.f32.mrb[131].mxu0 }
 0x6d0   :  { %3167 = vst [vmem:[#allocation5 + $0x118] sm:$0xff] %v3762_v8 }
 0x6d3   :  { %v3021_v10 = vpop.f32.mrb[132].mxu0 }
 0x6d4   :  { %v3763_v11 = vadd.f32 %v4820_v17, %v3021_v10  ;;  %v3023_v12 = vpop.f32.mrb[133].mxu0 }
 0x6d5   :  { %v3024_v13 = vpop.f32.mrb[134].mxu0 }
 0x6d6   :  { %3168 = vst [vmem:[#allocation5 + $0x120] sm:$0xff] %v3763_v11  ;;  %v3764_v7 = vadd.f32 %v4820_v17, %v3024_v13  ;;  %v3026_v14 = vpop.f32.mrb[135].mxu0 }
 0x6d8   :  { %3169 = vst [vmem:[#allocation5 + $0x128] sm:$0xff] %v3764_v7 }
 0x6db   :  { %v3029_v15 = vpop.f32.mrb[136].mxu0 }
 0x6dc   :  { %v3765_v16 = vadd.f32 %v4820_v17, %v3029_v15  ;;  %v3031_v18 = vpop.f32.mrb[137].mxu0 }
 0x6dd   :  { %v3032_v19 = vpop.f32.mrb[138].mxu0 }
 0x6de   :  { %3170 = vst [vmem:[#allocation5 + $0x130] sm:$0xff] %v3765_v16  ;;  %v3766_v20 = vadd.f32 %v4820_v17, %v3032_v19  ;;  %v3034_v21 = vpop.f32.mrb[139].mxu0 }
 0x6e0   :  { %3171 = vst [vmem:[#allocation5 + $0x138] sm:$0xff] %v3766_v20 }
 0x6e3   :  { %v3037_v22 = vpop.f32.mrb[140].mxu0 }
 0x6e4   :  { %v3767_v23 = vadd.f32 %v4820_v17, %v3037_v22  ;;  %v3039_v24 = vpop.f32.mrb[141].mxu0 }
 0x6e5   :  { %v3040_v25 = vpop.f32.mrb[142].mxu0 }
 0x6e6   :  { %3172 = vst [vmem:[#allocation5 + $0x140] sm:$0xff] %v3767_v23  ;;  %v3768_v26 = vadd.f32 %v4820_v17, %v3040_v25  ;;  %v3042_v27 = vpop.f32.mrb[143].mxu0 }
 0x6e8   :  { %3173 = vst [vmem:[#allocation5 + $0x148] sm:$0xff] %v3768_v26 }
 0x6eb   :  { %v3045_v29 = vpop.f32.mrb[144].mxu0 }
 0x6ec   :  { %v3769_v30 = vadd.f32 %v4820_v17, %v3045_v29  ;;  %v3047_v31 = vpop.f32.mrb[145].mxu0 }
 0x6ed   :  { %v3048_v32 = vpop.f32.mrb[146].mxu0 }
 0x6ee   :  { %3174 = vst [vmem:[#allocation5 + $0x150] sm:$0xff] %v3769_v30  ;;  %v3770_v33 = vadd.f32 %v4820_v17, %v3048_v32  ;;  %v3050_v34 = vpop.f32.mrb[147].mxu0 }
 0x6f0   :  { %3175 = vst [vmem:[#allocation5 + $0x158] sm:$0xff] %v3770_v33 }
 0x6f3   :  { %v3053_v35 = vpop.f32.mrb[148].mxu0 }
 0x6f4   :  { %v3771_v36 = vadd.f32 %v4820_v17, %v3053_v35  ;;  %v3055_v37 = vpop.f32.mrb[149].mxu0 }
 0x6f5   :  { %v3056_v38 = vpop.f32.mrb[150].mxu0 }
 0x6f6   :  { %3176 = vst [vmem:[#allocation5 + $0x160] sm:$0xff] %v3771_v36  ;;  %v3772_v39 = vadd.f32 %v4820_v17, %v3056_v38  ;;  %v3058_v40 = vpop.f32.mrb[151].mxu0 }
 0x6f8   :  { %3177 = vst [vmem:[#allocation5 + $0x168] sm:$0xff] %v3772_v39 }
 0x6fb   :  { %v3061_v41 = vpop.f32.mrb[152].mxu0 }
 0x6fc   :  { %v3773_v42 = vadd.f32 %v4820_v17, %v3061_v41  ;;  %v3063_v43 = vpop.f32.mrb[153].mxu0 }
 0x6fd   :  { %v3064_v44 = vpop.f32.mrb[154].mxu0 }
 0x6fe   :  { %3178 = vst [vmem:[#allocation5 + $0x170] sm:$0xff] %v3773_v42  ;;  %v3774_v45 = vadd.f32 %v4820_v17, %v3064_v44  ;;  %v3066_v46 = vpop.f32.mrb[155].mxu0 }
 0x700   :  { %3179 = vst [vmem:[#allocation5 + $0x178] sm:$0xff] %v3774_v45 }
 0x703   :  { %v3069_v47 = vpop.f32.mrb[156].mxu0 }
 0x704   :  { %v3775_v48 = vadd.f32 %v4820_v17, %v3069_v47  ;;  %v3071_v49 = vpop.f32.mrb[157].mxu0 }
 0x705   :  { %v3072_v50 = vpop.f32.mrb[158].mxu0 }
 0x706   :  { %3180 = vst [vmem:[#allocation5 + $0x180] sm:$0xff] %v3775_v48  ;;  %v3776_v51 = vadd.f32 %v4820_v17, %v3072_v50  ;;  %v3074_v52 = vpop.f32.mrb[159].mxu0 }
 0x708   :  { %3181 = vst [vmem:[#allocation5 + $0x188] sm:$0xff] %v3776_v51 }
 0x70b   :  { %v3077_v53 = vpop.f32.mrb[160].mxu0 }
 0x70c   :  { %v3777_v54 = vadd.f32 %v4820_v17, %v3077_v53  ;;  %v3079_v55 = vpop.f32.mrb[161].mxu0 }
 0x70d   :  { %v3080_v56 = vpop.f32.mrb[162].mxu0 }
 0x70e   :  { %3182 = vst [vmem:[#allocation5 + $0x190] sm:$0xff] %v3777_v54  ;;  %v3778_v57 = vadd.f32 %v4820_v17, %v3080_v56  ;;  %v3082_v58 = vpop.f32.mrb[163].mxu0 }
 0x710   :  { %3183 = vst [vmem:[#allocation5 + $0x198] sm:$0xff] %v3778_v57 }
 0x713   :  { %v3085_v59 = vpop.f32.mrb[164].mxu0 }
 0x714   :  { %v3779_v60 = vadd.f32 %v4820_v17, %v3085_v59  ;;  %v3087_v61 = vpop.f32.mrb[165].mxu0 }
 0x715   :  { %v3088_v62 = vpop.f32.mrb[166].mxu0 }
 0x716   :  { %3184 = vst [vmem:[#allocation5 + $0x1a0] sm:$0xff] %v3779_v60  ;;  %v3780_v63 = vadd.f32 %v4820_v17, %v3088_v62  ;;  %v3090_v0 = vpop.f32.mrb[167].mxu0 }
 0x718   :  { %3185 = vst [vmem:[#allocation5 + $0x1a8] sm:$0xff] %v3780_v63 }
 0x71b   :  { %v3093_v1 = vpop.f32.mrb[168].mxu0 }
 0x71c   :  { %v3781_v2 = vadd.f32 %v4820_v17, %v3093_v1  ;;  %v3095_v3 = vpop.f32.mrb[169].mxu0 }
 0x71d   :  { %v3096_v4 = vpop.f32.mrb[170].mxu0 }
 0x71e   :  { %3186 = vst [vmem:[#allocation5 + $0x1b0] sm:$0xff] %v3781_v2  ;;  %v3782_v5 = vadd.f32 %v4820_v17, %v3096_v4  ;;  %v3098_v28 = vpop.f32.mrb[171].mxu0 }
 0x720   :  { %3187 = vst [vmem:[#allocation5 + $0x1b8] sm:$0xff] %v3782_v5 }
 0x723   :  { %v3101_v6 = vpop.f32.mrb[172].mxu0 }
 0x724   :  { %v3783_v8 = vadd.f32 %v4820_v17, %v3101_v6  ;;  %v3103_v9 = vpop.f32.mrb[173].mxu0 }
 0x725   :  { %v3104_v10 = vpop.f32.mrb[174].mxu0 }
 0x726   :  { %3188 = vst [vmem:[#allocation5 + $0x1c0] sm:$0xff] %v3783_v8  ;;  %v3784_v11 = vadd.f32 %v4820_v17, %v3104_v10  ;;  %v3106_v12 = vpop.f32.mrb[175].mxu0 }
 0x728   :  { %3189 = vst [vmem:[#allocation5 + $0x1c8] sm:$0xff] %v3784_v11 }
 0x72b   :  { %v3109_v13 = vpop.f32.mrb[176].mxu0 }
 0x72c   :  { %v3785_v7 = vadd.f32 %v4820_v17, %v3109_v13  ;;  %v3111_v14 = vpop.f32.mrb[177].mxu0 }
 0x72d   :  { %v3112_v15 = vpop.f32.mrb[178].mxu0 }
 0x72e   :  { %3190 = vst [vmem:[#allocation5 + $0x1d0] sm:$0xff] %v3785_v7  ;;  %v3786_v16 = vadd.f32 %v4820_v17, %v3112_v15  ;;  %v3114_v18 = vpop.f32.mrb[179].mxu0 }
 0x730   :  { %3191 = vst [vmem:[#allocation5 + $0x1d8] sm:$0xff] %v3786_v16 }
 0x733   :  { %v3117_v19 = vpop.f32.mrb[180].mxu0 }
 0x734   :  { %v3787_v20 = vadd.f32 %v4820_v17, %v3117_v19  ;;  %v3119_v21 = vpop.f32.mrb[181].mxu0 }
 0x735   :  { %v3120_v22 = vpop.f32.mrb[182].mxu0 }
 0x736   :  { %3192 = vst [vmem:[#allocation5 + $0x1e0] sm:$0xff] %v3787_v20  ;;  %v3788_v23 = vadd.f32 %v4820_v17, %v3120_v22  ;;  %v3122_v24 = vpop.f32.mrb[183].mxu0 }
 0x738   :  { %3193 = vst [vmem:[#allocation5 + $0x1e8] sm:$0xff] %v3788_v23 }
 0x73b   :  { %v3125_v25 = vpop.f32.mrb[184].mxu0 }
 0x73c   :  { %v3789_v26 = vadd.f32 %v4820_v17, %v3125_v25  ;;  %v3127_v27 = vpop.f32.mrb[185].mxu0 }
 0x73d   :  { %v3128_v29 = vpop.f32.mrb[186].mxu0 }
 0x73e   :  { %3194 = vst [vmem:[#allocation5 + $0x1f0] sm:$0xff] %v3789_v26  ;;  %v3790_v30 = vadd.f32 %v4820_v17, %v3128_v29  ;;  %v3130_v31 = vpop.f32.mrb[187].mxu0 }
 0x740   :  { %3195 = vst [vmem:[#allocation5 + $0x1f8] sm:$0xff] %v3790_v30 }
 0x741   :  { %4451 = shalt.err (!%p4448_p12)
}
 0x742   :  { %s4452_s25 = scalar_lea.hbm %s4904_s6, 8192 }
 0x743   :  { %p4453_p13 = scmp.ne.s32.totalorder %s4904_s6, %s4452_s25  ;;  %p4456_p0 = scmp.lt.u32.totalorder %s4452_s25, %s4904_s6 }
 0x745   :  { %p4458_p1 = pnand %p4456_p0, %p4453_p13 }
 0x747   :  { %4461 = shalt.err (!%p4458_p1)
}
 0x748   :  { %s4471_s0 = smov 128   ;;  %s4472_s29 = smov 8  }
 0x749   :  { %3207 = dma.vmem_to_hbm [thread:$0]  %s3202_s21, 8192, %s4904_s6, [#allocation4], %s4471_s0, %s4471_s0, %s4472_s29  }
 0x74a   :  { %4464 = dma.done.wait [#allocation4], 8192  }
 0x74b   :  { %4465 = vsyncadd [#allocation4], 4294959104 }
 0x74c   :  { %3211 = vsyncpa [#allocation3], 1 }
 0x74d   :  { %3212 = vsyncpa [#allocation4], 1 }

</bundles_post_ra>
